<compile_context>
chip_gen: v7x
topology: tpu7x:2x2x1
jax: 0.10.0
libtpu: 0.0.40
codegen_flags: <defaults>
</compile_context>

<pallas_src>
import functools

import jax
import jax.numpy as jnp
from jax.experimental import pallas as pl
from jax.experimental.pallas import tpu as pltpu


# --------------------------------------------------------------------------- utilities
def _round_up(x, m):
    return ((x + m - 1) // m) * m


def _sublane_mult(dtype):
    """Sublane (second-minor) divisibility requirement for a block of this dtype."""
    return 8 * max(1, 4 // jnp.dtype(dtype).itemsize)


def _vmem_capacity_bytes():
    try:
        return int(pltpu.get_tpu_info().vmem_capacity_bytes)
    except Exception:
        return 64 << 20  # conservative (v7x-sized) fallback


def _pick_b_tile(B, target, mult):
    """Prefer a batch tile that divides B (no pad copy) and leaves >=2 blocks (megacore)."""
    divs = [tb for tb in range(mult, B + 1, mult) if B % tb == 0 and tb <= target]
    if divs:
        multi = [tb for tb in divs if B // tb >= 2]
        return max(multi) if multi else max(divs)
    return min(_round_up(B, mult), _round_up(target, mult))


def _pick_s_tile(S, TB, Dc, Dt, Fp, act_bytes, w_bytes, out_bytes, ts_mult, budget):
    """Largest legal S tile whose *full* VMEM working set fits the budget.

    Accounts for double-buffered activation & output blocks, weights (worst case:
    double-buffered, in case single-buffering is unavailable), packed biases and the
    f32 accumulator scratch — not just the trans block.
    """
    fixed = (2 * (Dc * Fp + Dt * Fp + 2 * Fp * Fp) * w_bytes   # wc, wt, wf_top, wf_bot
             + 2 * 8 * Fp * 4                                  # biases (padded to 8 rows)
             + 2 * TB * Dc * act_bytes                         # cnn block, double-buffered
             + 2 * TB * Fp * out_bytes                         # output block, double-buffered
             + TB * Dt * 4)                                    # f32 accumulator scratch
    cands = [ts for ts in range(1, S + 1)
             if S % ts == 0 and (ts % ts_mult == 0 or ts == S)]
    fits = [ts for ts in cands if fixed + 2 * TB * ts * Dt * act_bytes <= budget]
    return max(fits) if fits else min(cands)


# --------------------------------------------------------------------------- kernel
def fusion_kernel(cnn_ref, trans_ref, wc_ref, wt_ref, wf_top_ref, wf_bot_ref,
                  bias_ref, out_ref, acc_ref, *, inv_s):
    """One (B-tile, S-tile) grid step.

    cnn_ref    : [TB, Dc]       activation dtype (grid-invariant over s)
    trans_ref  : [TB, TS, Dt]   activation dtype (this S tile)
    wc_ref     : [Dc, Fp]       weight dtype
    wt_ref     : [Dt, Fp]       weight dtype (untiled; 1/S applied at finalize)
    wf_top_ref : [Fp, Fp]       fuser[1] weight, cnn half
    wf_bot_ref : [Fp, Fp]       fuser[1] weight, trans half
    bias_ref   : [3, Fp] f32    rows: bc, bt, bf
    out_ref    : [TB, Fp]
    acc_ref    : [TB, Dt] f32   running sequence-sum accumulator (VMEM scratch)
    """
    s = pl.program_id(1)

    @pl.when(s == 0)
    def _():
        acc_ref[...] = jnp.zeros_like(acc_ref)

    # Sequence pre-reduction: f32 sum over this S tile (VPU/XLU only — no MXU work,
    # no weight replication, no per-tile matmul).
    acc_ref[...] += jnp.sum(trans_ref[...].astype(jnp.float32), axis=1)

    @pl.when(s == pl.num_programs(1) - 1)
    def _():
        f32 = jnp.float32
        wdt = wc_ref.dtype                       # MXU compute dtype (weight dtype)
        bc = bias_ref[0:1, :]
        bt = bias_ref[1:2, :]
        bf = bias_ref[2:3, :]

        cnn_proj = jnp.dot(cnn_ref[...].astype(wdt), wc_ref[...],
                           preferred_element_type=f32) + bc
        trans_mean = acc_ref[...] * inv_s        # single f32 1/S scale
        trans_proj = jnp.dot(trans_mean.astype(wdt), wt_ref[...],
                             preferred_element_type=f32) + bt

        wf_top = wf_top_ref[...]
        wf_bot = wf_bot_ref[...]

        # gate = sigmoid([cnn_proj ; trans_proj] @ Wf^T + bf) — split into two K=Fp dots.
        # (The gate shares fuser[1]'s weight/bias with the final Linear, per the module.)
        gate = jax.nn.sigmoid(
            jnp.dot(cnn_proj.astype(wdt), wf_top, preferred_element_type=f32)
            + jnp.dot(trans_proj.astype(wdt), wf_bot, preferred_element_type=f32)
            + bf)

        # fused = relu([cnn_proj*g ; trans_proj*(1-g)]) @ Wf^T + bf
        # (outer relu and fuser[0]'s ReLU fold into one relu), again split per half.
        fused = (jnp.dot(jnp.maximum(cnn_proj * gate, 0.0).astype(wdt), wf_top,
                         preferred_element_type=f32)
                 + jnp.dot(jnp.maximum(trans_proj * (1.0 - gate), 0.0).astype(wdt), wf_bot,
                           preferred_element_type=f32)
                 + bf)
        out_ref[...] = fused.astype(out_ref.dtype)


# --------------------------------------------------------------------------- wrappers
def prepack_fusion_params(params, weight_dtype=jnp.bfloat16):
    """One-time weight prep (transpose to [in,out], lane-pad F, split Wf, pack biases).

    Hoisted out of the per-call path so padded weights are not re-materialized per step.
    params follow the PyTorch Linear convention:
       wc: [F, Dc], bc: [F]   (linear_cnn)
       wt: [F, Dt], bt: [F]   (linear_trans)
       wf: [F, 2F], bf: [F]   (fuser[1])
    """
    F, Dc = params["wc"].shape
    Dt = params["wt"].shape[1]
    Fp = _round_up(F, 128)
    wd = weight_dtype
    f32 = jnp.float32

    wc = jnp.zeros((Dc, Fp), wd).at[:, :F].set(params["wc"].T.astype(wd))
    wt = jnp.zeros((Dt, Fp), wd).at[:, :F].set(params["wt"].T.astype(wd))
    wf_t = params["wf"].T                                     # [2F, F]
    wf_top = jnp.zeros((Fp, Fp), wd).at[:F, :F].set(wf_t[:F].astype(wd))
    wf_bot = jnp.zeros((Fp, Fp), wd).at[:F, :F].set(wf_t[F:].astype(wd))
    biases = (jnp.zeros((3, Fp), f32)
              .at[0, :F].set(params["bc"].astype(f32))
              .at[1, :F].set(params["bt"].astype(f32))
              .at[2, :F].set(params["bf"].astype(f32)))
    return {"wc": wc, "wt": wt, "wf_top": wf_top, "wf_bot": wf_bot,
            "biases": biases, "fused_dim": F}


def fusion_layer(cnn_feat, trans_feat, packed, *, out_dtype=jnp.float32,
                 b_tile=None, s_tile=None):
    """cnn_feat: [B, Dc], trans_feat: [B, S, Dt], packed = prepack_fusion_params(...)."""
    B, Dc = cnn_feat.shape
    _, S, Dt = trans_feat.shape
    F = packed["fused_dim"]
    Fp = packed["wc"].shape[1]
    assert packed["wc"].shape[0] == Dc and packed["wt"].shape[0] == Dt

    cap = _vmem_capacity_bytes()
    vmem_limit = (cap * 3) // 4                  # ~96 MiB on 128-MiB parts, 48 MiB on v7x
    budget = int(vmem_limit * 0.85)              # headroom for compiler internal scratch

    act_bytes = jnp.dtype(cnn_feat.dtype).itemsize
    w_bytes = jnp.dtype(packed["wc"].dtype).itemsize
    out_bytes = jnp.dtype(out_dtype).itemsize
    tb_mult = max(_sublane_mult(cnn_feat.dtype), _sublane_mult(out_dtype))
    ts_mult = _sublane_mult(trans_feat.dtype)

    tb_target = 256 if cap >= (100 << 20) else 128
    TB = b_tile if b_tile is not None else _pick_b_tile(B, tb_target, tb_mult)
    Bp = _round_up(B, TB)
    TS = s_tile if s_tile is not None else _pick_s_tile(
        S, TB, Dc, Dt, Fp, act_bytes, w_bytes, out_bytes, ts_mult, budget)
    if S % TS != 0 or not (TS % ts_mult == 0 or TS == S):
        raise ValueError(f"s_tile={TS} must divide S={S} and be a multiple of {ts_mult}")
    NB, NS = Bp // TB, S // TS

    # Activations go in native dtype/layout; pad the batch only if TB does not divide B.
    if Bp != B:
        cnn_in = jnp.zeros((Bp, Dc), cnn_feat.dtype).at[:B].set(cnn_feat)
        trans_in = jnp.zeros((Bp, S, Dt), trans_feat.dtype).at[:B].set(trans_feat)
    else:
        cnn_in, trans_in = cnn_feat, trans_feat

    kernel = functools.partial(fusion_kernel, inv_s=1.0 / S)

    def _run(single_buffer_weights):
        wkw = {"pipeline_mode": pl.Buffered(1)} if single_buffer_weights else {}
        return pl.pallas_call(
            kernel,
            out_shape=jax.ShapeDtypeStruct((Bp, Fp), out_dtype),
            grid=(NB, NS),
            in_specs=[
                pl.BlockSpec((TB, Dc),     lambda b, s: (b, 0)),
                pl.BlockSpec((TB, TS, Dt), lambda b, s: (b, s, 0)),
                pl.BlockSpec((Dc, Fp),     lambda b, s: (0, 0), **wkw),
                pl.BlockSpec((Dt, Fp),     lambda b, s: (0, 0), **wkw),
                pl.BlockSpec((Fp, Fp),     lambda b, s: (0, 0), **wkw),
                pl.BlockSpec((Fp, Fp),     lambda b, s: (0, 0), **wkw),
                pl.BlockSpec((3, Fp),      lambda b, s: (0, 0), **wkw),
            ],
            out_specs=pl.BlockSpec((TB, Fp), lambda b, s: (b, 0)),
            scratch_shapes=[pltpu.VMEM((TB, Dt), jnp.float32)],
            compiler_params=pltpu.CompilerParams(
                dimension_semantics=("parallel", "arbitrary"),
                vmem_limit_bytes=int(vmem_limit)),
        )(cnn_in, trans_in, packed["wc"], packed["wt"],
          packed["wf_top"], packed["wf_bot"], packed["biases"])

    try:
        out = jax.block_until_ready(_run(True))
    except Exception:
        # TODO(synk): pl.Buffered(1) single-buffering rejected on this jax version;
        # falling back to default double-buffered invariant operands.
        out = jax.block_until_ready(_run(False))

    return out[:B, :F]


# --------------------------------------------------------------------------- reference
def fusion_layer_ref(cnn_feat, trans_feat, params):
    """Pure-JAX reference matching the PyTorch forward exactly."""
    cnn_proj = cnn_feat @ params["wc"].T + params["bc"]
    trans_proj = trans_feat.mean(axis=1) @ params["wt"].T + params["bt"]
    gate_input = jnp.concatenate([cnn_proj, trans_proj], axis=-1)
    gate = jax.nn.sigmoid(gate_input @ params["wf"].T + params["bf"])
    weighted_cnn = cnn_proj * gate
    weighted_trans = trans_proj * (1.0 - gate)
    fusion_input = jnp.concatenate([weighted_cnn, weighted_trans], axis=-1)
    x = jnp.maximum(fusion_input, 0.0)      # outer relu
    x = jnp.maximum(x, 0.0)                 # fuser[0] ReLU (no-op after the outer relu)
    return x @ params["wf"].T + params["bf"]


def init_params(key, cnn_dim, trans_dim, fused_dim):
    ks = jax.random.split(key, 6)

    def lin(kw, kb, fan_in, fan_out):
        bound = 1.0 / jnp.sqrt(fan_in)
        w = jax.random.uniform(kw, (fan_out, fan_in), jnp.float32, -bound, bound)
        b = jax.random.uniform(kb, (fan_out,), jnp.float32, -bound, bound)
        return w, b

    wc, bc = lin(ks[0], ks[1], cnn_dim, fused_dim)
    wt, bt = lin(ks[2], ks[3], trans_dim, fused_dim)
    wf, bf = lin(ks[4], ks[5], fused_dim * 2, fused_dim)
    return {"wc": wc, "bc": bc, "wt": wt, "bt": bt, "wf": wf, "bf": bf}


if __name__ == "__main__":
    B, S = 8, 16
    cnn_dim, trans_dim, fused_dim = 32, 64, 64

    key = jax.random.PRNGKey(0)
    k_cnn, k_trans, k_params = jax.random.split(key, 3)

    cnn_feat = jax.random.normal(k_cnn, (B, cnn_dim), jnp.float32)
    trans_feat = jax.random.normal(k_trans, (B, S, trans_dim), jnp.float32)
    params = init_params(k_params, cnn_dim, trans_dim, fused_dim)

    ref = fusion_layer_ref(cnn_feat, trans_feat, params)

    # f32 weights + explicit s_tile=8 to exercise the S-accumulation grid (NS=2).
    packed_f32 = prepack_fusion_params(params, weight_dtype=jnp.float32)
    out_f32 = jax.block_until_ready(
        fusion_layer(cnn_feat, trans_feat, packed_f32, s_tile=8))
    assert out_f32.shape == (B, fused_dim)
    assert jnp.allclose(out_f32, ref, atol=2e-2, rtol=2e-2), "f32 mismatch vs reference"

    # bf16 weights (halved weight HBM traffic, native MXU rate), automatic tile selection.
    packed_bf16 = prepack_fusion_params(params, weight_dtype=jnp.bfloat16)
    out_bf16 = jax.block_until_ready(
        fusion_layer(cnn_feat, trans_feat, packed_bf16))
    assert out_bf16.shape == (B, fused_dim)
    assert jnp.allclose(out_bf16, ref, atol=6e-2, rtol=6e-2), "bf16 mismatch vs reference"

    print("KERNEL_OK")
</pallas_src>

<mosaic_0001>
module attributes {stable_mosaic.version = 11 : i64} {
  func.func @fusion_kernel(%arg0: i32, %arg1: i32, %arg2: memref<8x32xf32, #tpu.memory_space<vmem>>, %arg3: memref<8x8x64xf32, #tpu.memory_space<vmem>>, %arg4: memref<32x128xf32, #tpu.memory_space<vmem>>, %arg5: memref<64x128xf32, #tpu.memory_space<vmem>>, %arg6: memref<128x128xf32, #tpu.memory_space<vmem>>, %arg7: memref<128x128xf32, #tpu.memory_space<vmem>>, %arg8: memref<3x128xf32, #tpu.memory_space<vmem>>, %arg9: memref<8x128xf32, #tpu.memory_space<vmem>>, %arg10: memref<8x64xf32, #tpu.memory_space<vmem>>) attributes {dimension_semantics = [#tpu.dimension_semantics<parallel>, #tpu.dimension_semantics<arbitrary>], iteration_bounds = array<i64: 1, 2>, scalar_prefetch = 0 : i64, scratch_operands = 1 : i64, tpu.core_type = #tpu.core_type<tc>, window_params = [{transform_indices = @transform_0, window_bounds = array<i64: 8, 32>}, {transform_indices = @transform_1, window_bounds = array<i64: 8, 8, 64>}, {pipeline_mode = #tpu.pipeline_mode<synchronous>, transform_indices = @transform_2, window_bounds = array<i64: 32, 128>}, {pipeline_mode = #tpu.pipeline_mode<synchronous>, transform_indices = @transform_3, window_bounds = array<i64: 64, 128>}, {pipeline_mode = #tpu.pipeline_mode<synchronous>, transform_indices = @transform_4, window_bounds = array<i64: 128, 128>}, {pipeline_mode = #tpu.pipeline_mode<synchronous>, transform_indices = @transform_5, window_bounds = array<i64: 128, 128>}, {pipeline_mode = #tpu.pipeline_mode<synchronous>, transform_indices = @transform_6, window_bounds = array<i64: 3, 128>}, {transform_indices = @transform_7, window_bounds = array<i64: 8, 128>}]} {
    %c0_i32 = arith.constant 0 : i32
    %0 = arith.cmpi eq, %arg1, %c0_i32 : i32
    %1 = arith.extui %0 : i1 to i32
    %c0_i32_0 = arith.constant 0 : i32
    %2 = arith.cmpi ne, %1, %c0_i32_0 : i32
    scf.if %2 {
      %cst_8 = arith.constant 0.000000e+00 : f32
      %11 = vector.broadcast %cst_8 : f32 to vector<8x64xf32>
      %c0_9 = arith.constant 0 : index
      %c0_10 = arith.constant 0 : index
      %12 = vector.load %arg10[%c0_9, %c0_10] : memref<8x64xf32, #tpu.memory_space<vmem>>, vector<8x64xf32>
      tpu.vector_store %arg10[%c0_9, %c0_10], %11 {strides = array<i32>} : memref<8x64xf32, #tpu.memory_space<vmem>>, vector<8x64xf32>,
    } else {
    }
    %c0 = arith.constant 0 : index
    %c0_1 = arith.constant 0 : index
    %3 = vector.load %arg10[%c0, %c0_1] : memref<8x64xf32, #tpu.memory_space<vmem>>, vector<8x64xf32>
    %c0_2 = arith.constant 0 : index
    %c0_3 = arith.constant 0 : index
    %c0_4 = arith.constant 0 : index
    %4 = vector.load %arg3[%c0_2, %c0_3, %c0_4] : memref<8x8x64xf32, #tpu.memory_space<vmem>>, vector<8x8x64xf32>
    %cst = arith.constant dense<0.000000e+00> : vector<8x64xf32>
    %5 = vector.multi_reduction <add>, %4, %cst [1] : vector<8x8x64xf32> to vector<8x64xf32>
    %6 = arith.addf %3, %5 : vector<8x64xf32>
    %c0_5 = arith.constant 0 : index
    %c0_6 = arith.constant 0 : index
    %7 = vector.load %arg10[%c0_5, %c0_6] : memref<8x64xf32, #tpu.memory_space<vmem>>, vector<8x64xf32>
    tpu.vector_store %arg10[%c0_5, %c0_6], %6 {strides = array<i32>} : memref<8x64xf32, #tpu.memory_space<vmem>>, vector<8x64xf32>,
    %c1_i32 = arith.constant 1 : i32
    %8 = arith.cmpi eq, %arg1, %c1_i32 : i32
    %9 = arith.extui %8 : i1 to i32
    %c0_i32_7 = arith.constant 0 : i32
    %10 = arith.cmpi ne, %9, %c0_i32_7 : i32
    scf.if %10 {
      %c0_8 = arith.constant 0 : index
      %c0_9 = arith.constant 0 : index
      %11 = vector.load %arg8[%c0_8, %c0_9] : memref<3x128xf32, #tpu.memory_space<vmem>>, vector<1x128xf32>
      %c1 = arith.constant 1 : index
      %c0_10 = arith.constant 0 : index
      %12 = vector.load %arg8[%c1, %c0_10] : memref<3x128xf32, #tpu.memory_space<vmem>>, vector<1x128xf32>
      %c2 = arith.constant 2 : index
      %c0_11 = arith.constant 0 : index
      %13 = vector.load %arg8[%c2, %c0_11] : memref<3x128xf32, #tpu.memory_space<vmem>>, vector<1x128xf32>
      %c0_12 = arith.constant 0 : index
      %c0_13 = arith.constant 0 : index
      %14 = vector.load %arg2[%c0_12, %c0_13] : memref<8x32xf32, #tpu.memory_space<vmem>>, vector<8x32xf32>
      %c0_14 = arith.constant 0 : index
      %c0_15 = arith.constant 0 : index
      %15 = vector.load %arg4[%c0_14, %c0_15] : memref<32x128xf32, #tpu.memory_space<vmem>>, vector<32x128xf32>
      %cst_16 = arith.constant dense<0.000000e+00> : vector<8x128xf32>
      %16 = tpu.matmul %14, %15, %cst_16 {dimension_numbers = #tpu.dot_dimension_numbers<[1], [0], [0], [1], [0, 0, 1, 1], [], []>} : vector<8x32xf32>, vector<32x128xf32>, vector<8x128xf32> -> vector<8x128xf32>
      %17 = vector.broadcast %11 : vector<1x128xf32> to vector<8x128xf32>
      %18 = arith.addf %16, %17 : vector<8x128xf32>
      %c0_17 = arith.constant 0 : index
      %c0_18 = arith.constant 0 : index
      %19 = vector.load %arg10[%c0_17, %c0_18] : memref<8x64xf32, #tpu.memory_space<vmem>>, vector<8x64xf32>
      %cst_19 = arith.constant 6.250000e-02 : f32
      %20 = vector.broadcast %cst_19 : f32 to vector<8x64xf32>
      %21 = arith.mulf %19, %20 : vector<8x64xf32>
      %c0_20 = arith.constant 0 : index
      %c0_21 = arith.constant 0 : index
      %22 = vector.load %arg5[%c0_20, %c0_21] : memref<64x128xf32, #tpu.memory_space<vmem>>, vector<64x128xf32>
      %cst_22 = arith.constant dense<0.000000e+00> : vector<8x128xf32>
      %23 = tpu.matmul %21, %22, %cst_22 {dimension_numbers = #tpu.dot_dimension_numbers<[1], [0], [0], [1], [0, 0, 1, 1], [], []>} : vector<8x64xf32>, vector<64x128xf32>, vector<8x128xf32> -> vector<8x128xf32>
      %24 = vector.broadcast %12 : vector<1x128xf32> to vector<8x128xf32>
      %25 = arith.addf %23, %24 : vector<8x128xf32>
      %c0_23 = arith.constant 0 : index
      %c0_24 = arith.constant 0 : index
      %26 = vector.load %arg6[%c0_23, %c0_24] : memref<128x128xf32, #tpu.memory_space<vmem>>, vector<128x128xf32>
      %c0_25 = arith.constant 0 : index
      %c0_26 = arith.constant 0 : index
      %27 = vector.load %arg7[%c0_25, %c0_26] : memref<128x128xf32, #tpu.memory_space<vmem>>, vector<128x128xf32>
      %cst_27 = arith.constant dense<0.000000e+00> : vector<8x128xf32>
      %28 = tpu.matmul %18, %26, %cst_27 {dimension_numbers = #tpu.dot_dimension_numbers<[1], [0], [0], [1], [0, 0, 1, 1], [], []>} : vector<8x128xf32>, vector<128x128xf32>, vector<8x128xf32> -> vector<8x128xf32>
      %cst_28 = arith.constant dense<0.000000e+00> : vector<8x128xf32>
      %29 = tpu.matmul %25, %27, %cst_28 {dimension_numbers = #tpu.dot_dimension_numbers<[1], [0], [0], [1], [0, 0, 1, 1], [], []>} : vector<8x128xf32>, vector<128x128xf32>, vector<8x128xf32> -> vector<8x128xf32>
      %30 = arith.addf %28, %29 : vector<8x128xf32>
      %31 = vector.broadcast %13 : vector<1x128xf32> to vector<8x128xf32>
      %32 = arith.addf %30, %31 : vector<8x128xf32>
      %33 = arith.negf %32 : vector<8x128xf32>
      %34 = math.exp %33 : vector<8x128xf32>
      %cst_29 = arith.constant 1.000000e+00 : f32
      %35 = vector.broadcast %cst_29 : f32 to vector<8x128xf32>
      %36 = arith.addf %35, %34 : vector<8x128xf32>
      %37 = arith.divf %35, %36 : vector<8x128xf32>
      %38 = arith.mulf %18, %37 : vector<8x128xf32>
      %cst_30 = arith.constant 0.000000e+00 : f32
      %39 = vector.broadcast %cst_30 : f32 to vector<8x128xf32>
      %40 = arith.maximumf %38, %39 : vector<8x128xf32>
      %cst_31 = arith.constant dense<0.000000e+00> : vector<8x128xf32>
      %41 = tpu.matmul %40, %26, %cst_31 {dimension_numbers = #tpu.dot_dimension_numbers<[1], [0], [0], [1], [0, 0, 1, 1], [], []>} : vector<8x128xf32>, vector<128x128xf32>, vector<8x128xf32> -> vector<8x128xf32>
      %cst_32 = arith.constant 1.000000e+00 : f32
      %42 = vector.broadcast %cst_32 : f32 to vector<8x128xf32>
      %43 = arith.subf %42, %37 : vector<8x128xf32>
      %44 = arith.mulf %25, %43 : vector<8x128xf32>
      %cst_33 = arith.constant 0.000000e+00 : f32
      %45 = vector.broadcast %cst_33 : f32 to vector<8x128xf32>
      %46 = arith.maximumf %44, %45 : vector<8x128xf32>
      %cst_34 = arith.constant dense<0.000000e+00> : vector<8x128xf32>
      %47 = tpu.matmul %46, %27, %cst_34 {dimension_numbers = #tpu.dot_dimension_numbers<[1], [0], [0], [1], [0, 0, 1, 1], [], []>} : vector<8x128xf32>, vector<128x128xf32>, vector<8x128xf32> -> vector<8x128xf32>
      %48 = arith.addf %41, %47 : vector<8x128xf32>
      %49 = vector.broadcast %13 : vector<1x128xf32> to vector<8x128xf32>
      %50 = arith.addf %48, %49 : vector<8x128xf32>
      %c0_35 = arith.constant 0 : index
      %c0_36 = arith.constant 0 : index
      %51 = vector.load %arg9[%c0_35, %c0_36] : memref<8x128xf32, #tpu.memory_space<vmem>>, vector<8x128xf32>
      tpu.vector_store %arg9[%c0_35, %c0_36], %50 {strides = array<i32>} : memref<8x128xf32, #tpu.memory_space<vmem>>, vector<8x128xf32>,
    } else {
    }
    return
  }
  func.func @transform_0(%arg0: i32, %arg1: i32) -> (i32, i32) {
    %c0_i32 = arith.constant 0 : i32
    %c0_i32_0 = arith.constant 0 : i32
    return %arg0, %c0_i32 : i32, i32
  }
  func.func @transform_1(%arg0: i32, %arg1: i32) -> (i32, i32, i32) {
    %c0_i32 = arith.constant 0 : i32
    %c0_i32_0 = arith.constant 0 : i32
    return %arg0, %arg1, %c0_i32 : i32, i32, i32
  }
  func.func @transform_2(%arg0: i32, %arg1: i32) -> (i32, i32) {
    %c0_i32 = arith.constant 0 : i32
    %c0_i32_0 = arith.constant 0 : i32
    %c0_i32_1 = arith.constant 0 : i32
    return %c0_i32, %c0_i32_0 : i32, i32
  }
  func.func @transform_3(%arg0: i32, %arg1: i32) -> (i32, i32) {
    %c0_i32 = arith.constant 0 : i32
    %c0_i32_0 = arith.constant 0 : i32
    %c0_i32_1 = arith.constant 0 : i32
    return %c0_i32, %c0_i32_0 : i32, i32
  }
  func.func @transform_4(%arg0: i32, %arg1: i32) -> (i32, i32) {
    %c0_i32 = arith.constant 0 : i32
    %c0_i32_0 = arith.constant 0 : i32
    %c0_i32_1 = arith.constant 0 : i32
    return %c0_i32, %c0_i32_0 : i32, i32
  }
  func.func @transform_5(%arg0: i32, %arg1: i32) -> (i32, i32) {
    %c0_i32 = arith.constant 0 : i32
    %c0_i32_0 = arith.constant 0 : i32
    %c0_i32_1 = arith.constant 0 : i32
    return %c0_i32, %c0_i32_0 : i32, i32
  }
  func.func @transform_6(%arg0: i32, %arg1: i32) -> (i32, i32) {
    %c0_i32 = arith.constant 0 : i32
    %c0_i32_0 = arith.constant 0 : i32
    %c0_i32_1 = arith.constant 0 : i32
    return %c0_i32, %c0_i32_0 : i32, i32
  }
  func.func @transform_7(%arg0: i32, %arg1: i32) -> (i32, i32) {
    %c0_i32 = arith.constant 0 : i32
    %c0_i32_0 = arith.constant 0 : i32
    return %arg0, %c0_i32 : i32, i32
  }
}

module attributes {stable_mosaic.version = 11 : i64} {
  func.func @fusion_kernel(%arg0: i32, %arg1: i32, %arg2: memref<8x32xf32, #tpu.memory_space<vmem>>, %arg3: memref<8x8x64xf32, #tpu.memory_space<vmem>>, %arg4: memref<32x128xf32, #tpu.memory_space<vmem>>, %arg5: memref<64x128xf32, #tpu.memory_space<vmem>>, %arg6: memref<128x128xf32, #tpu.memory_space<vmem>>, %arg7: memref<128x128xf32, #tpu.memory_space<vmem>>, %arg8: memref<3x128xf32, #tpu.memory_space<vmem>>, %arg9: memref<8x128xf32, #tpu.memory_space<vmem>>, %arg10: memref<8x64xf32, #tpu.memory_space<vmem>>) attributes {dimension_semantics = [#tpu.dimension_semantics<parallel>, #tpu.dimension_semantics<arbitrary>], iteration_bounds = array<i64: 1, 2>, scalar_prefetch = 0 : i64, scratch_operands = 1 : i64, tpu.core_type = #tpu.core_type<tc>, window_params = [{transform_indices = @transform_0, window_bounds = array<i64: 8, 32>}, {transform_indices = @transform_1, window_bounds = array<i64: 8, 8, 64>}, {pipeline_mode = #tpu.pipeline_mode<synchronous>, transform_indices = @transform_2, window_bounds = array<i64: 32, 128>}, {pipeline_mode = #tpu.pipeline_mode<synchronous>, transform_indices = @transform_3, window_bounds = array<i64: 64, 128>}, {pipeline_mode = #tpu.pipeline_mode<synchronous>, transform_indices = @transform_4, window_bounds = array<i64: 128, 128>}, {pipeline_mode = #tpu.pipeline_mode<synchronous>, transform_indices = @transform_5, window_bounds = array<i64: 128, 128>}, {pipeline_mode = #tpu.pipeline_mode<synchronous>, transform_indices = @transform_6, window_bounds = array<i64: 3, 128>}, {transform_indices = @transform_7, window_bounds = array<i64: 8, 128>}]} {
    %c0_i32 = arith.constant 0 : i32
    %0 = arith.cmpi eq, %arg1, %c0_i32 : i32
    %1 = arith.extui %0 : i1 to i32
    %c0_i32_0 = arith.constant 0 : i32
    %2 = arith.cmpi ne, %1, %c0_i32_0 : i32
    scf.if %2 {
      %cst_8 = arith.constant 0.000000e+00 : f32
      %11 = vector.broadcast %cst_8 : f32 to vector<8x64xf32>
      %c0_9 = arith.constant 0 : index
      %c0_10 = arith.constant 0 : index
      %12 = vector.load %arg10[%c0_9, %c0_10] : memref<8x64xf32, #tpu.memory_space<vmem>>, vector<8x64xf32>
      tpu.vector_store %arg10[%c0_9, %c0_10], %11 {strides = array<i32>} : memref<8x64xf32, #tpu.memory_space<vmem>>, vector<8x64xf32>,
    } else {
    }
    %c0 = arith.constant 0 : index
    %c0_1 = arith.constant 0 : index
    %3 = vector.load %arg10[%c0, %c0_1] : memref<8x64xf32, #tpu.memory_space<vmem>>, vector<8x64xf32>
    %c0_2 = arith.constant 0 : index
    %c0_3 = arith.constant 0 : index
    %c0_4 = arith.constant 0 : index
    %4 = vector.load %arg3[%c0_2, %c0_3, %c0_4] : memref<8x8x64xf32, #tpu.memory_space<vmem>>, vector<8x8x64xf32>
    %cst = arith.constant dense<0.000000e+00> : vector<8x64xf32>
    %5 = vector.multi_reduction <add>, %4, %cst [1] : vector<8x8x64xf32> to vector<8x64xf32>
    %6 = arith.addf %3, %5 : vector<8x64xf32>
    %c0_5 = arith.constant 0 : index
    %c0_6 = arith.constant 0 : index
    %7 = vector.load %arg10[%c0_5, %c0_6] : memref<8x64xf32, #tpu.memory_space<vmem>>, vector<8x64xf32>
    tpu.vector_store %arg10[%c0_5, %c0_6], %6 {strides = array<i32>} : memref<8x64xf32, #tpu.memory_space<vmem>>, vector<8x64xf32>,
    %c1_i32 = arith.constant 1 : i32
    %8 = arith.cmpi eq, %arg1, %c1_i32 : i32
    %9 = arith.extui %8 : i1 to i32
    %c0_i32_7 = arith.constant 0 : i32
    %10 = arith.cmpi ne, %9, %c0_i32_7 : i32
    scf.if %10 {
      %c0_8 = arith.constant 0 : index
      %c0_9 = arith.constant 0 : index
      %11 = vector.load %arg8[%c0_8, %c0_9] : memref<3x128xf32, #tpu.memory_space<vmem>>, vector<1x128xf32>
      %c1 = arith.constant 1 : index
      %c0_10 = arith.constant 0 : index
      %12 = vector.load %arg8[%c1, %c0_10] : memref<3x128xf32, #tpu.memory_space<vmem>>, vector<1x128xf32>
      %c2 = arith.constant 2 : index
      %c0_11 = arith.constant 0 : index
      %13 = vector.load %arg8[%c2, %c0_11] : memref<3x128xf32, #tpu.memory_space<vmem>>, vector<1x128xf32>
      %c0_12 = arith.constant 0 : index
      %c0_13 = arith.constant 0 : index
      %14 = vector.load %arg2[%c0_12, %c0_13] : memref<8x32xf32, #tpu.memory_space<vmem>>, vector<8x32xf32>
      %c0_14 = arith.constant 0 : index
      %c0_15 = arith.constant 0 : index
      %15 = vector.load %arg4[%c0_14, %c0_15] : memref<32x128xf32, #tpu.memory_space<vmem>>, vector<32x128xf32>
      %cst_16 = arith.constant dense<0.000000e+00> : vector<8x128xf32>
      %16 = tpu.matmul %14, %15, %cst_16 {dimension_numbers = #tpu.dot_dimension_numbers<[1], [0], [0], [1], [0, 0, 1, 1], [], []>} : vector<8x32xf32>, vector<32x128xf32>, vector<8x128xf32> -> vector<8x128xf32>
      %17 = vector.broadcast %11 : vector<1x128xf32> to vector<8x128xf32>
      %18 = arith.addf %16, %17 : vector<8x128xf32>
      %c0_17 = arith.constant 0 : index
      %c0_18 = arith.constant 0 : index
      %19 = vector.load %arg10[%c0_17, %c0_18] : memref<8x64xf32, #tpu.memory_space<vmem>>, vector<8x64xf32>
      %cst_19 = arith.constant 6.250000e-02 : f32
      %20 = vector.broadcast %cst_19 : f32 to vector<8x64xf32>
      %21 = arith.mulf %19, %20 : vector<8x64xf32>
      %c0_20 = arith.constant 0 : index
      %c0_21 = arith.constant 0 : index
      %22 = vector.load %arg5[%c0_20, %c0_21] : memref<64x128xf32, #tpu.memory_space<vmem>>, vector<64x128xf32>
      %cst_22 = arith.constant dense<0.000000e+00> : vector<8x128xf32>
      %23 = tpu.matmul %21, %22, %cst_22 {dimension_numbers = #tpu.dot_dimension_numbers<[1], [0], [0], [1], [0, 0, 1, 1], [], []>} : vector<8x64xf32>, vector<64x128xf32>, vector<8x128xf32> -> vector<8x128xf32>
      %24 = vector.broadcast %12 : vector<1x128xf32> to vector<8x128xf32>
      %25 = arith.addf %23, %24 : vector<8x128xf32>
      %c0_23 = arith.constant 0 : index
      %c0_24 = arith.constant 0 : index
      %26 = vector.load %arg6[%c0_23, %c0_24] : memref<128x128xf32, #tpu.memory_space<vmem>>, vector<128x128xf32>
      %c0_25 = arith.constant 0 : index
      %c0_26 = arith.constant 0 : index
      %27 = vector.load %arg7[%c0_25, %c0_26] : memref<128x128xf32, #tpu.memory_space<vmem>>, vector<128x128xf32>
      %cst_27 = arith.constant dense<0.000000e+00> : vector<8x128xf32>
      %28 = tpu.matmul %18, %26, %cst_27 {dimension_numbers = #tpu.dot_dimension_numbers<[1], [0], [0], [1], [0, 0, 1, 1], [], []>} : vector<8x128xf32>, vector<128x128xf32>, vector<8x128xf32> -> vector<8x128xf32>
      %cst_28 = arith.constant dense<0.000000e+00> : vector<8x128xf32>
      %29 = tpu.matmul %25, %27, %cst_28 {dimension_numbers = #tpu.dot_dimension_numbers<[1], [0], [0], [1], [0, 0, 1, 1], [], []>} : vector<8x128xf32>, vector<128x128xf32>, vector<8x128xf32> -> vector<8x128xf32>
      %30 = arith.addf %28, %29 : vector<8x128xf32>
      %31 = vector.broadcast %13 : vector<1x128xf32> to vector<8x128xf32>
      %32 = arith.addf %30, %31 : vector<8x128xf32>
      %33 = arith.negf %32 : vector<8x128xf32>
      %34 = math.exp %33 : vector<8x128xf32>
      %cst_29 = arith.constant 1.000000e+00 : f32
      %35 = vector.broadcast %cst_29 : f32 to vector<8x128xf32>
      %36 = arith.addf %35, %34 : vector<8x128xf32>
      %37 = arith.divf %35, %36 : vector<8x128xf32>
      %38 = arith.mulf %18, %37 : vector<8x128xf32>
      %cst_30 = arith.constant 0.000000e+00 : f32
      %39 = vector.broadcast %cst_30 : f32 to vector<8x128xf32>
      %40 = arith.maximumf %38, %39 : vector<8x128xf32>
      %cst_31 = arith.constant dense<0.000000e+00> : vector<8x128xf32>
      %41 = tpu.matmul %40, %26, %cst_31 {dimension_numbers = #tpu.dot_dimension_numbers<[1], [0], [0], [1], [0, 0, 1, 1], [], []>} : vector<8x128xf32>, vector<128x128xf32>, vector<8x128xf32> -> vector<8x128xf32>
      %cst_32 = arith.constant 1.000000e+00 : f32
      %42 = vector.broadcast %cst_32 : f32 to vector<8x128xf32>
      %43 = arith.subf %42, %37 : vector<8x128xf32>
      %44 = arith.mulf %25, %43 : vector<8x128xf32>
      %cst_33 = arith.constant 0.000000e+00 : f32
      %45 = vector.broadcast %cst_33 : f32 to vector<8x128xf32>
      %46 = arith.maximumf %44, %45 : vector<8x128xf32>
      %cst_34 = arith.constant dense<0.000000e+00> : vector<8x128xf32>
      %47 = tpu.matmul %46, %27, %cst_34 {dimension_numbers = #tpu.dot_dimension_numbers<[1], [0], [0], [1], [0, 0, 1, 1], [], []>} : vector<8x128xf32>, vector<128x128xf32>, vector<8x128xf32> -> vector<8x128xf32>
      %48 = arith.addf %41, %47 : vector<8x128xf32>
      %49 = vector.broadcast %13 : vector<1x128xf32> to vector<8x128xf32>
      %50 = arith.addf %48, %49 : vector<8x128xf32>
      %c0_35 = arith.constant 0 : index
      %c0_36 = arith.constant 0 : index
      %51 = vector.load %arg9[%c0_35, %c0_36] : memref<8x128xf32, #tpu.memory_space<vmem>>, vector<8x128xf32>
      tpu.vector_store %arg9[%c0_35, %c0_36], %50 {strides = array<i32>} : memref<8x128xf32, #tpu.memory_space<vmem>>, vector<8x128xf32>,
    } else {
    }
    return
  }
  func.func @transform_0(%arg0: i32, %arg1: i32) -> (i32, i32) {
    %c0_i32 = arith.constant 0 : i32
    %c0_i32_0 = arith.constant 0 : i32
    return %arg0, %c0_i32 : i32, i32
  }
  func.func @transform_1(%arg0: i32, %arg1: i32) -> (i32, i32, i32) {
    %c0_i32 = arith.constant 0 : i32
    %c0_i32_0 = arith.constant 0 : i32
    return %arg0, %arg1, %c0_i32 : i32, i32, i32
  }
  func.func @transform_2(%arg0: i32, %arg1: i32) -> (i32, i32) {
    %c0_i32 = arith.constant 0 : i32
    %c0_i32_0 = arith.constant 0 : i32
    %c0_i32_1 = arith.constant 0 : i32
    return %c0_i32, %c0_i32_0 : i32, i32
  }
  func.func @transform_3(%arg0: i32, %arg1: i32) -> (i32, i32) {
    %c0_i32 = arith.constant 0 : i32
    %c0_i32_0 = arith.constant 0 : i32
    %c0_i32_1 = arith.constant 0 : i32
    return %c0_i32, %c0_i32_0 : i32, i32
  }
  func.func @transform_4(%arg0: i32, %arg1: i32) -> (i32, i32) {
    %c0_i32 = arith.constant 0 : i32
    %c0_i32_0 = arith.constant 0 : i32
    %c0_i32_1 = arith.constant 0 : i32
    return %c0_i32, %c0_i32_0 : i32, i32
  }
  func.func @transform_5(%arg0: i32, %arg1: i32) -> (i32, i32) {
    %c0_i32 = arith.constant 0 : i32
    %c0_i32_0 = arith.constant 0 : i32
    %c0_i32_1 = arith.constant 0 : i32
    return %c0_i32, %c0_i32_0 : i32, i32
  }
  func.func @transform_6(%arg0: i32, %arg1: i32) -> (i32, i32) {
    %c0_i32 = arith.constant 0 : i32
    %c0_i32_0 = arith.constant 0 : i32
    %c0_i32_1 = arith.constant 0 : i32
    return %c0_i32, %c0_i32_0 : i32, i32
  }
  func.func @transform_7(%arg0: i32, %arg1: i32) -> (i32, i32) {
    %c0_i32 = arith.constant 0 : i32
    %c0_i32_0 = arith.constant 0 : i32
    return %arg0, %c0_i32 : i32, i32
  }
}

</mosaic_0001>

<bundles_post_ra>
// kernel: tpu_custom_call.1
= control target key start
LH: loop header
LB: loop body
LE: loop exit
PB: predicated region body
PF: predicated region fallthrough
CT: control target
= control target key end

     0   :  { %s2361_s0 = inlined_call_operand.hbm [shape: f32[8,32], index: 0, kind: input, shape index: {}]   ;;  %s2362_s1 = inlined_call_operand.hbm [shape: f32[8,16,64], index: 1, kind: input, shape index: {}]   ;;  %s2363_s2 = inlined_call_operand.hbm [shape: f32[32,128], index: 2, kind: input, shape index: {}]   ;;  %s2364_s3 = inlined_call_operand.hbm [shape: f32[64,128], index: 3, kind: input, shape index: {}]   ;;  %s2365_s4 = inlined_call_operand.hbm [shape: f32[128,128], index: 4, kind: input, shape index: {}]   ;;  %s2366_s5 = inlined_call_operand.hbm [shape: f32[128,128], index: 5, kind: input, shape index: {}]   ;;  %s2367_s6 = inlined_call_operand.vmem [shape: f32[3,128], index: 6, kind: input, shape index: {}]   ;;  %s2368_s7 = inlined_call_operand.hbm [shape: f32[8,128], index: 7, kind: output, shape index: {}]  }
   0x1   :  { %2373 = sst [smem:[#allocation21_spill]] %s2363_s2 }
   0x2   :  { %12 = vsyncpa [#allocation4], 0 }
   0x3   :  { %13 = vsyncpa [#allocation7], 0 }
   0x4   :  { %15 = vsyncpa [#allocation7 + $0x1], 0 }
   0x5   :  { %16 = vsyncpa [#allocation10], 0 }
   0x6   :  { %17 = vsyncpa [#allocation13], 0 }
   0x7   :  { %18 = vsyncpa [#allocation5], 0  ;;  %s1954_s24 = smov 0   ;;  %s1956_s25 = smov 0  }
   0x8   :  { %s1958_s26 = smov 0   ;;  %s1960_s27 = smov 0  }
   0x9   :  { %s1962_s28 = smov 0   ;;  %s1964_s29 = smov 0  }
   0xa LB: > { %s1983_s30 = sadd.s32 4294967295, %s1898_s29   ;;  %p84_p0 = scmp.ne.s32.totalorder %s1882_s25, %s1878_s24  ;;  %s1898_s29 = sphi %s1964_s29, %s24_s29   ;;  %s1894_s28 = sphi %s1962_s28, %s2395_s28   ;;  %s1890_s27 = sphi %s1960_s27, %s2394_s27   ;;  %s1886_s26 = sphi %s1958_s26, %s2393_s26   ;;  %s1882_s25 = sphi %s1956_s25, %s2392_s25   ;;  %s1878_s24 = sphi %s1954_s24, %s2391_s24  }
   0xb   : > { %p2369_p1 = scmp.eq.s32.totalorder %s1983_s30, 0  ;;  %p1114_p2 = scmp.ge.s32.totalorder %s1898_s29, 1 }
   0xc   : > { %p226_p3 = scmp.lt.s32.totalorder %s1898_s29, 3  ;;  %s1900_s10 = smov [#allocation8]  }
   0xd   : > { %p1991_p4 = por %p2369_p1, %p84_p0  ;;  %s251_s11 = sshll.u32 %s1900_s10, 4  ;;  %s252_s11 = int_to_ptr.vmem [resolvable:$true] %s251_s11 }
   0xe   : > { %p1995_p5 = pnand %p1114_p2, %p226_p3  ;;  %s1901_s13 = smov [#allocation9]  }
   0xf   : > { %s2374_s8 = scalar_select %p1991_p4, 1, 0 }
  0x10   : > { %s2375_s9 = scalar_select %p1995_p5, 1, 0 }
  0x11   : > { %p1534_p6 = pneg %p1995_p5  ;;  %s264_s14 = sshll.u32 %s1901_s13, 4  ;;  %s2007_s14 = int_to_ptr.vmem [resolvable:$true] %s264_s14 }
  0x12   : > { %s2377_s2 = sld [smem:[#allocation21_spill]] }
  0x13   : > { %p2003_p7 = pnand %p1534_p6, %p2369_p1 }
  0x15   : > { %p2017_p9 = pneg %p2003_p7 }
  0x18   : > { %s1632_s17 = scalar_lea.hbm %s2377_s2, 512 }
  0x19   : > { %p1633_p8 = scmp.ne.s32.totalorder %s2377_s2, %s1632_s17  ;;  %p1639_p12 = scmp.lt.u32.totalorder %s1632_s17, %s2377_s2 }
  0x1b   : > { %p1635_p10 = pnand %p2017_p9, %p1633_p8 }
  0x1d   : > { %p1636_p11 = pneg %p1635_p10 }
  0x1f   : > { %p1641_p13 = pnand %p1639_p12, %p1636_p11 }
  0x21   : > { %1644 = shalt.err (!%p1641_p13)
}
  0x22   : > { %s1645_s23 = scalar_lea.vmem %s252_s11, 512  ;;  %p1653_p6 = scmp.lt.s32.totalorder %s252_s11, %s252_s11 }
  0x23   : > { %p1646_p0 = scmp.ne.s32.totalorder %s252_s11, %s1645_s23  ;;  %p1654_p1 = scmp.lt.s32.totalorder %s1645_s23, %s1645_s23 }
  0x25   : > { %p1648_p2 = pnand %p1646_p0, %p2017_p9  ;;  %p1655_p4 = por %p1654_p1, %p1653_p6 }
  0x27   : > { %p1649_p3 = pneg %p1648_p2 }
  0x29   : > { %p1656_p5 = pnand %p1655_p4, %p1649_p3 }
  0x2b   : > { %1659 = shalt.err (!%p1656_p5)
}
  0x2c   : > { %s2372_s24 = smov 128   ;;  %s1903_s10 = smov 8  }
  0x2d   : > { %1540 = dma.hbm_to_vmem [thread:$0]  (!%p2003_p7), %s2377_s2, 512, %s252_s11, [#allocation7], %s2372_s24, %s2372_s24, %s1903_s10  }
  0x2e   : > { %s1660_s18 = scalar_lea.hbm %s2364_s3, 1024 }
  0x2f   : > { %p1661_p1 = scmp.ne.s32.totalorder %s2364_s3, %s1660_s18  ;;  %p1667_p8 = scmp.lt.u32.totalorder %s1660_s18, %s2364_s3 }
  0x31   : > { %p1663_p4 = pnand %p1661_p1, %p2017_p9 }
  0x33   : > { %p1664_p5 = pneg %p1663_p4 }
  0x35   : > { %p1669_p10 = pnand %p1667_p8, %p1664_p5 }
  0x37   : > { %1672 = shalt.err (!%p1669_p10)
}
  0x38   : > { %s1673_s11 = scalar_lea.vmem %s2007_s14, 1024  ;;  %p1681_p0 = scmp.lt.s32.totalorder %s2007_s14, %s2007_s14 }
  0x39   : > { %p1674_p11 = scmp.ne.s32.totalorder %s2007_s14, %s1673_s11  ;;  %p1682_p2 = scmp.lt.s32.totalorder %s1673_s11, %s1673_s11 }
  0x3b   : > { %p1676_p12 = pnand %p1674_p11, %p2017_p9  ;;  %p1683_p3 = por %p1682_p2, %p1681_p0 }
  0x3d   : > { %p1677_p13 = pneg %p1676_p12 }
  0x3f   : > { %p1684_p6 = pnand %p1683_p3, %p1677_p13 }
  0x41   : > { %1687 = shalt.err (!%p1684_p6)
}
  0x42   : > { %1543 = dma.hbm_to_vmem [thread:$0]  (!%p2003_p7), %s2364_s3, 1024, %s2007_s14, [#allocation10], %s2372_s24, %s2372_s24, %s1903_s10  }
  0x43   : > { %s1904_s16 = smov [#allocation3]   ;;  %s1905_s18 = smov [#allocation11]  }
  0x44   : > { %s241_s17 = sshll.u32 %s1904_s16, 4  ;;  %s277_s19 = sshll.u32 %s1905_s18, 4  ;;  %s242_s17 = int_to_ptr.vmem [resolvable:$true] %s241_s17  ;;  %s2062_s19 = int_to_ptr.vmem [resolvable:$true] %s277_s19 }
  0x45   : > { %s1688_s23 = scalar_lea.hbm %s2361_s0, 128 }
  0x46   : > { %p1689_p1 = scmp.ne.s32.totalorder %s2361_s0, %s1688_s23  ;;  %p1695_p8 = scmp.lt.u32.totalorder %s1688_s23, %s2361_s0 }
  0x48   : > { %p1691_p4 = pnand %p1689_p1, %p2017_p9 }
  0x4a   : > { %p1692_p5 = pneg %p1691_p4 }
  0x4c   : > { %p1697_p10 = pnand %p1695_p8, %p1692_p5 }
  0x4e   : > { %1700 = shalt.err (!%p1697_p10)
}
  0x4f   : > { %s1701_s15 = scalar_lea.vmem %s242_s17, 128  ;;  %p1709_p0 = scmp.lt.s32.totalorder %s242_s17, %s242_s17 }
  0x50   : > { %p1702_p11 = scmp.ne.s32.totalorder %s242_s17, %s1701_s15  ;;  %p1710_p2 = scmp.lt.s32.totalorder %s1701_s15, %s1701_s15 }
  0x52   : > { %p1704_p12 = pnand %p1702_p11, %p2017_p9  ;;  %p1711_p3 = por %p1710_p2, %p1709_p0 }
  0x54   : > { %p1705_p13 = pneg %p1704_p12 }
  0x56   : > { %p1712_p6 = pnand %p1711_p3, %p1705_p13 }
  0x58   : > { %1715 = shalt.err (!%p1712_p6)
}
  0x59   : > { %1537 = dma.hbm_to_vmem [thread:$0]  (!%p2003_p7), %s2361_s0, 128, %s242_s17, [#allocation4]  }
  0x5a   : > { %s1716_s22 = scalar_lea.hbm %s2365_s4, 2048 }
  0x5b   : > { %p1717_p1 = scmp.ne.s32.totalorder %s2365_s4, %s1716_s22  ;;  %p1723_p8 = scmp.lt.u32.totalorder %s1716_s22, %s2365_s4 }
  0x5d   : > { %p1719_p4 = pnand %p1717_p1, %p2017_p9 }
  0x5f   : > { %p1720_p5 = pneg %p1719_p4 }
  0x61   : > { %p1725_p10 = pnand %p1723_p8, %p1720_p5 }
  0x63   : > { %1728 = shalt.err (!%p1725_p10)
}
  0x64   : > { %s1729_s17 = scalar_lea.vmem %s2062_s19, 2048  ;;  %p1737_p0 = scmp.lt.s32.totalorder %s2062_s19, %s2062_s19 }
  0x65   : > { %p1730_p11 = scmp.ne.s32.totalorder %s2062_s19, %s1729_s17  ;;  %p1738_p2 = scmp.lt.s32.totalorder %s1729_s17, %s1729_s17 }
  0x67   : > { %p1732_p12 = pnand %p1730_p11, %p2017_p9  ;;  %p1739_p3 = por %p1738_p2, %p1737_p0 }
  0x69   : > { %p1733_p13 = pneg %p1732_p12 }
  0x6b   : > { %p1740_p6 = pnand %p1739_p3, %p1733_p13 }
  0x6d   : > { %1743 = shalt.err (!%p1740_p6)
}
  0x6e   : > { %1546 = dma.hbm_to_vmem [thread:$0]  (!%p2003_p7), %s2365_s4, 2048, %s2062_s19, [#allocation10], %s2372_s24, %s2372_s24, %s1903_s10  }
  0x6f   : > { %s1906_s16 = smov [#allocation12]   ;;  %s1744_s23 = scalar_lea.hbm %s2366_s5, 2048 }
  0x70   : > { %s290_s18 = sshll.u32 %s1906_s16, 4  ;;  %p1745_p1 = scmp.ne.s32.totalorder %s2366_s5, %s1744_s23  ;;  %s291_s18 = int_to_ptr.vmem [resolvable:$true] %s290_s18 }
  0x71   : > { %p1751_p8 = scmp.lt.u32.totalorder %s1744_s23, %s2366_s5 }
  0x72   : > { %p1747_p4 = pnand %p1745_p1, %p2017_p9 }
  0x74   : > { %p1748_p5 = pneg %p1747_p4 }
  0x76   : > { %p1753_p10 = pnand %p1751_p8, %p1748_p5 }
  0x78   : > { %1756 = shalt.err (!%p1753_p10)
}
  0x79   : > { %s1757_s19 = scalar_lea.vmem %s291_s18, 2048  ;;  %p1765_p0 = scmp.lt.s32.totalorder %s291_s18, %s291_s18 }
  0x7a   : > { %p1758_p11 = scmp.ne.s32.totalorder %s291_s18, %s1757_s19  ;;  %p1766_p2 = scmp.lt.s32.totalorder %s1757_s19, %s1757_s19 }
  0x7c   : > { %p1760_p12 = pnand %p1758_p11, %p2017_p9  ;;  %p1767_p3 = por %p1766_p2, %p1765_p0 }
  0x7e   : > { %p1761_p13 = pneg %p1760_p12 }
  0x80   : > { %p1768_p6 = pnand %p1767_p3, %p1761_p13 }
  0x82   : > { %1771 = shalt.err (!%p1768_p6)
}
  0x83   : > { %1549 = dma.hbm_to_vmem [thread:$0]  (!%p2003_p7), %s2366_s5, 2048, %s291_s18, [#allocation13], %s2372_s24, %s2372_s24, %s1903_s10  }
  0x84   : > { %s33_s20 = sadd.s32 1, %s1894_s28  ;;  %s71_s12 = sadd.s32 1, %s1886_s26 }
  0x85   : > { %p34_p9 = scmp.ge.s32.totalorder %s33_s20, 2  ;;  %p78_p1 = scmp.ne.s32.totalorder %s1886_s26, %s1882_s25 }
  0x86   : > { %p79_p4 = scmp.eq.s32.totalorder %s1898_s29, 0  ;;  %p1559_p8 = scmp.lt.s32.totalorder %s1898_s29, 2 }
  0x87   : > { %s2397_s20 = smov (%p34_p9, %s33_s20), 0  ;;  %s307_s21 = sand.u32 1, %s1898_s29  }
  0x88   : > { %p80_p5 = por %p79_p4, %p78_p1  ;;  %s67_s16 = ssub.s32 %s1894_s28, %s2397_s20 }
  0x89   : > { %p69_p10 = scmp.eq.s32.totalorder %s67_s16, 0  ;;  %s309_s22 = sand.u32 1, %s1886_s26  }
  0x8a   : > { %s1122_s23 = sshll.u32 %s1894_s28, 7  ;;  %s1121_s13 = sshll.u32 %s309_s22, 6 }
  0x8b   : > { %s2143_s11 = scalar_select %p69_p10, %s1886_s26, %s71_s12  }
  0x8c   : > { %s2148_s17 = scalar_lea.hbm %s2362_s1, %s1122_s23  ;;  %p2150_p7 = pnand %p1559_p8, %p80_p5 }
  0x8d   : > { %s311_s15 = scalar_lea.vmem [#allocation6], %s1121_s13  ;;  %s2156_s12 = scalar_lea.sflag [#allocation7], %s307_s21 }
  0x8e   : > { %s320_s2 = sshll.u32 %s311_s15, 4  ;;  %s1772_s16 = scalar_lea.hbm %s2148_s17, 1024  ;;  %s2154_s2 = int_to_ptr.vmem [resolvable:$true] %s320_s2 }
  0x8f   : > { %p1773_p11 = scmp.ne.s32.totalorder %s2148_s17, %s1772_s16  ;;  %p1774_p12 = pneg %p2150_p7 }
  0x90   : > { %s1777_s14 = scalar_lea.hbm %s2362_s1, 2048  ;;  %p1778_p2 = scmp.lt.u32.totalorder %s2148_s17, %s2362_s1 }
  0x91   : > { %p1775_p13 = pnand %p1774_p12, %p1773_p11  ;;  %p1779_p3 = scmp.lt.u32.totalorder %s1777_s14, %s1772_s16 }
  0x92   : > { %p1781_p9 = scmp.lt.u32.totalorder %s1772_s16, %s2148_s17 }
  0x93   : > { %p1776_p0 = pneg %p1775_p13  ;;  %p1780_p6 = por %p1779_p3, %p1778_p2 }
  0x95   : > { %p1782_p1 = por %p1781_p9, %p1780_p6 }
  0x97   : > { %p1783_p4 = pnand %p1782_p1, %p1776_p0 }
  0x99   : > { %1786 = shalt.err (!%p1783_p4)
}
  0x9a   : > { %s1787_s21 = scalar_lea.vmem %s2154_s2, 1024  ;;  %s1907_s13 = smov [#allocation6]  }
  0x9b   : > { %p1788_p5 = scmp.ne.s32.totalorder %s2154_s2, %s1787_s21  ;;  %s1792_s15 = sshll.u32 %s1907_s13, 4  ;;  %s1793_s15 = int_to_ptr.vmem [resolvable:$false] %s1792_s15 }
  0x9c   : > { %s1794_s24 = scalar_lea.vmem %s1793_s15, 2048  ;;  %p1795_p11 = scmp.lt.s32.totalorder %s2154_s2, %s1793_s15 }
  0x9d   : > { %p1790_p8 = pnand %p1788_p5, %p1774_p12  ;;  %p1796_p13 = scmp.lt.s32.totalorder %s1794_s24, %s1787_s21 }
  0x9f   : > { %p1791_p10 = pneg %p1790_p8  ;;  %p1797_p2 = por %p1796_p13, %p1795_p11 }
  0xa1   : > { %p1798_p3 = pnand %p1797_p2, %p1791_p10 }
  0xa3   : > { %1801 = shalt.err (!%p1798_p3)
}
  0xa4   : > { %s1908_s16 = smov 256   ;;  %s2380_s22 = smov 128  }
  0xa5   : > { %1553 = dma.hbm_to_vmem [thread:$0]  (!%p2150_p7), %s2148_s17, 1024, %s2154_s2, %s2156_s12, %s1908_s16, %s2380_s22, %s1903_s10  }
  0xa6   : > { %p2381_p12 = scmp.ne.s32.totalorder %s2375_s9, 0 }
  0xa7   : > { %p2382_p0 = scmp.eq.s32.totalorder (!%p2381_p12), %s1983_s30, 0 }
  0xa8   : > { %332 = sbr.rel (%p2381_p12) target bundleno = 938 (0x3aa), region = 48 }
  0xaf   : > { %1853 = dma.done.wait (%p2382_p0), [#allocation4], 128   ;;  %p2383_p6 = pmov %p2382_p0 }
  0xb0   : > { %s338_s23 = sand.u32 1, %s1983_s30   ;;  %s340_s19 = sand.u32 1, %s1882_s25  }
  0xb1   : > { %1855 = vsyncadd (%p2383_p6), [#allocation4], 4294967168  ;;  %s1125_s14 = sshll.u32 %s340_s19, 6  ;;  %s339_s18 = scalar_lea.sflag [#allocation7], %s338_s23 }
  0xb2   : > { %s342_s21 = scalar_lea.vmem [#allocation6], %s1125_s14  ;;  %p2384_p9 = scmp.ne.s32.totalorder %s2374_s8, 0 }
  0xb4   : > { %1857 = dma.done.wait (%p2384_p9), %s339_s18, 1024  }
  0xb5   : > { %1859 = vsyncadd (%p2384_p9), %s339_s18, 4294966272  ;;  %p2385_p7 = pmov %p2382_p0 }
  0xb6   : > { %p2386_p1 = pmov %p2382_p0 }
  0xb7   : > { %1861 = dma.done.wait (%p2385_p7), [#allocation7], 512  }
  0xb8   : > { %1863 = vsyncadd (%p2386_p1), [#allocation7], 4294966784  ;;  %p2387_p4 = pmov %p2382_p0 }
  0xb9   : > { %p2388_p5 = pmov %p2382_p0 }
  0xba   : > { %1865 = dma.done.wait (%p2387_p4), [#allocation10], 3072  }
  0xbb   : > { %1867 = vsyncadd (%p2388_p5), [#allocation10], 4294964224  ;;  %p2389_p8 = pmov %p2382_p0 }
  0xbc   : > { %p2390_p10 = pmov %p2382_p0 }
  0xbd   : > { %1869 = dma.done.wait (%p2389_p8), [#allocation13], 2048  }
  0xbe   : > { %1871 = vsyncadd (%p2390_p10), [#allocation13], 4294965248  ;;  %p1130_p11 = scmp.ne.s32.totalorder %s1890_s27, 0 }
  0xbf   : > { %vm389_vm0 = vcmask (!%p1130_p11), 523264   ;;  %v1909_v0 = vmov (!%p1130_p11), 0.0  }
  0xc0   : > { %388 = sbr.rel (%p1130_p11) target bundleno = 199 (0xc7), region = 76  ;;  %390 = vst.msk [vmem:[#allocation2] sm:$0xff] (!%p1130_p11), %vm389_vm0, %v1909_v0 }
  0xc7 PF: > { %v392_v1 = vld [vmem:[%s342_s21] sm:$0xff]  ;;  %v393_v2 = vld [vmem:[%s342_s21 + $0x8] sm:$0xff]  ;;  %vm400_vm1 = vcmask 523264   ;;  %v394_v3 = vld [vmem:[%s342_s21 + $0x10] sm:$0xff]  ;;  %vm465_vm2 = vcmask 1041409   ;;  %vm467_vm3 = vcmask 1042434  }
  0xc8   : > { %v395_v4 = vld [vmem:[%s342_s21 + $0x18] sm:$0xff]  ;;  %v396_v5 = vld [vmem:[%s342_s21 + $0x20] sm:$0xff]  ;;  %v401_v6 = vsel %vm400_vm1, %v392_v1, 0.0  ;;  %v408_v7 = vsel %vm400_vm1, %v393_v2, 0.0  ;;  %v397_v8 = vld [vmem:[%s342_s21 + $0x28] sm:$0xff]  ;;  %v415_v13 = vsel %vm400_vm1, %v394_v3, 0.0 }
  0xc9   : > { %v398_v9 = vld [vmem:[%s342_s21 + $0x30] sm:$0xff]  ;;  %v399_v10 = vld [vmem:[%s342_s21 + $0x38] sm:$0xff]  ;;  %v402_v11 = vrot.slane %v401_v6, 4  ;;  %v409_v12 = vrot.slane %v408_v7, 4  ;;  %v416_v14 = vrot.slane %v415_v13, 4  ;;  %v422_v15 = vsel %vm400_vm1, %v395_v4, 0.0 }
  0xca   : > { %v429_v16 = vsel %vm400_vm1, %v396_v5, 0.0  ;;  %v436_v17 = vsel %vm400_vm1, %v397_v8, 0.0  ;;  %v423_v20 = vrot.slane %v422_v15, 4  ;;  %v443_v24 = vsel %vm400_vm1, %v398_v9, 0.0  ;;  %v391_v5 = vld [vmem:[#allocation2] sm:$0xff]  ;;  %p1131_p13 = scmp.ne.s32.totalorder %s1890_s27, 1 }
  0xcb   : > { %v403_v18 = vadd.f32 %v402_v11, %v401_v6  ;;  %v410_v19 = vadd.f32 %v409_v12, %v408_v7  ;;  %v430_v21 = vrot.slane %v429_v16, 4  ;;  %v417_v22 = vadd.f32 %v416_v14, %v415_v13  ;;  %v575_v11 = vld [vmem:[#allocation9 + $0x8] sm:$0xff] (!%p1131_p13)  ;;  %v576_v12 = vld [vmem:[#allocation9 + $0x10] sm:$0xff] (!%p1131_p13) }
  0xcc   : > { %v437_v23 = vrot.slane %v436_v17, 4  ;;  %v450_v25 = vsel %vm400_vm1, %v399_v10, 0.0  ;;  %vm469_vm4 = vcmask 1043459   ;;  %v424_v28 = vadd.f32 %v423_v20, %v422_v15  ;;  %v574_v10 = vld [vmem:[#allocation9] sm:$0xff] (!%p1131_p13)  ;;  %v577_v15 = vld [vmem:[#allocation9 + $0x18] sm:$0xff] (!%p1131_p13) }
  0xcd   : > { %v404_v26 = vrot.slane %v403_v18, 2  ;;  %v411_v27 = vrot.slane %v410_v19, 2  ;;  %v431_v29 = vadd.f32 %v430_v21, %v429_v16  ;;  %v418_v30 = vrot.slane %v417_v22, 2  ;;  %v490_v16 = vld [vmem:[#allocation8] sm:$0xff] (!%p1131_p13) }
  0xce   : > { %v438_v31 = vadd.f32 %v437_v23, %v436_v17  ;;  %v444_v32 = vrot.slane %v443_v24, 4  ;;  %v451_v33 = vrot.slane %v450_v25, 4  ;;  %v425_v36 = vrot.slane %v424_v28, 2  ;;  %v491_v17 = vld [vmem:[#allocation8 + $0x8] sm:$0xff] (!%p1131_p13)  ;;  %v578_v23 = vld [vmem:[#allocation9 + $0x20] sm:$0xff] (!%p1131_p13) }
  0xcf   : > { %v405_v34 = vadd.f32 %v404_v26, %v403_v18  ;;  %v412_v35 = vadd.f32 %v411_v27, %v410_v19  ;;  %v432_v37 = vrot.slane %v431_v29, 2  ;;  %v419_v38 = vadd.f32 %v418_v30, %v417_v22  ;;  %v492_v19 = vld [vmem:[#allocation8 + $0x10] sm:$0xff] (!%p1131_p13)  ;;  %v493_v22 = vld [vmem:[#allocation8 + $0x18] sm:$0xff] (!%p1131_p13)  ;;  %v675_v26 = vld [vmem:[#allocation12] sm:$0xff] (!%p1131_p13) }
  0xd0   : > { %v439_v39 = vrot.slane %v438_v31, 2  ;;  %v445_v40 = vadd.f32 %v444_v32, %v443_v24  ;;  %v452_v41 = vadd.f32 %v451_v33, %v450_v25  ;;  %v426_v44 = vadd.f32 %v425_v36, %v424_v28  ;;  %v579_v24 = vld [vmem:[#allocation9 + $0x28] sm:$0xff] (!%p1131_p13)  ;;  %v581_v30 = vld [vmem:[#allocation9 + $0x38] sm:$0xff] (!%p1131_p13)  ;;  %v677_v33 = vld [vmem:[#allocation12 + $0x10] sm:$0xff] (!%p1131_p13) }
  0xd1   : > { %v406_v42 = vrot.slane %v405_v34, 1  ;;  %v413_v43 = vrot.slane %v412_v35, 1  ;;  %v433_v45 = vadd.f32 %v432_v37, %v431_v29  ;;  %v420_v46 = vrot.slane %v419_v38, 1  ;;  %v676_v27 = vld [vmem:[#allocation12 + $0x8] sm:$0xff] (!%p1131_p13)  ;;  %v580_v29 = vld [vmem:[#allocation9 + $0x30] sm:$0xff] (!%p1131_p13)  ;;  %v659_v37 = vld [vmem:[#allocation11] sm:$0xff] (!%p1131_p13) }
  0xd2   : > { %v440_v47 = vadd.f32 %v439_v39, %v438_v31  ;;  %v446_v48 = vrot.slane %v445_v40, 2  ;;  %v453_v49 = vrot.slane %v452_v41, 2  ;;  %v427_v52 = vrot.slane %v426_v44, 1  ;;  %v489_v31 = vld [vmem:[#allocation3] sm:$0xff] (!%p1131_p13) }
  0xd3   : > { %v407_v50 = vadd.f32 %v406_v42, %v405_v34  ;;  %v414_v51 = vadd.f32 %v413_v43, %v412_v35  ;;  %v434_v53 = vrot.slane %v433_v45, 1  ;;  %v421_v54 = vadd.f32 %v420_v46, %v419_v38  ;;  %v678_v34 = vld [vmem:[#allocation12 + $0x18] sm:$0xff] (!%p1131_p13)  ;;  %v660_v38 = vld [vmem:[#allocation11 + $0x8] sm:$0xff] (!%p1131_p13) }
  0xd4   : > { %v441_v55 = vrot.slane %v440_v47, 1  ;;  %v447_v56 = vadd.f32 %v446_v48, %v445_v40  ;;  %v454_v57 = vadd.f32 %v453_v49, %v452_v41  ;;  %v428_v58 = vadd.f32 %v427_v52, %v426_v44  ;;  %v679_v40 = vld [vmem:[#allocation12 + $0x20] sm:$0xff] (!%p1131_p13)  ;;  %v680_v41 = vld [vmem:[#allocation12 + $0x28] sm:$0xff] (!%p1131_p13)  ;;  %v661_v44 = vld [vmem:[#allocation11 + $0x10] sm:$0xff] (!%p1131_p13) }
  0xd5   : > { %v435_v59 = vadd.f32 %v434_v53, %v433_v45  ;;  %v466_v60 = vsel %vm465_vm2, %v414_v51, %v407_v50  ;;  %vm471_vm5 = vcmask 1044484   ;;  %vm473_vm6 = vcmask 1045509   ;;  %v662_v45 = vld [vmem:[#allocation11 + $0x18] sm:$0xff] (!%p1131_p13)  ;;  %v663_v50 = vld [vmem:[#allocation11 + $0x20] sm:$0xff] (!%p1131_p13)  ;;  %v664_v51 = vld [vmem:[#allocation11 + $0x28] sm:$0xff] (!%p1131_p13) }
  0xd6   : > { %v442_v61 = vadd.f32 %v441_v55, %v440_v47  ;;  %v448_v62 = vrot.slane %v447_v56, 1  ;;  %v455_v63 = vrot.slane %v454_v57, 1  ;;  %v468_v0 = vsel %vm467_vm3, %v421_v54, %v466_v60  ;;  %v681_v47 = vld [vmem:[#allocation12 + $0x30] sm:$0xff] (!%p1131_p13)  ;;  %v682_v48 = vld [vmem:[#allocation12 + $0x38] sm:$0xff] (!%p1131_p13)  ;;  %v683_v53 = vld [vmem:[#allocation12 + $0x40] sm:$0xff] (!%p1131_p13) }
  0xd7   : > { %v470_v1 = vsel %vm469_vm4, %v428_v58, %v468_v0  ;;  %vm475_vm7 = vcmask 1046534   ;;  %vm477_vm8 = vcmask 1047559   ;;  %v1910_v13 = vmov (!%p1131_p13), 0.0|0.0   ;;  %v684_v54 = vld [vmem:[#allocation12 + $0x48] sm:$0xff] (!%p1131_p13)  ;;  %v686_v60 = vld [vmem:[#allocation12 + $0x58] sm:$0xff] (!%p1131_p13) }
  0xd8   : > { %v449_v2 = vadd.f32 %v448_v62, %v447_v56  ;;  %v456_v3 = vadd.f32 %v455_v63, %v454_v57  ;;  %v472_v4 = vsel %vm471_vm5, %v435_v59, %v470_v1  ;;  %485 = sbr.rel (%p1131_p13) target bundleno = 913 (0x391), region = 80  ;;  %1400 = vmatprep.subr.bf16.mxu1 (!%p1131_p13), %v1910_v13  ;;  %v1401_v14 = vpack.c.bf16 (!%p1131_p13), %v575_v11, %v574_v10  ;;  %v665_v56 = vld [vmem:[#allocation11 + $0x30] sm:$0xff] (!%p1131_p13)  ;;  %v666_v57 = vld [vmem:[#allocation11 + $0x38] sm:$0xff] (!%p1131_p13)  ;;  %v667_v62 = vld [vmem:[#allocation11 + $0x40] sm:$0xff] (!%p1131_p13) }
  0xd9   : > { %v474_v6 = vsel %vm473_vm6, %v442_v61, %v472_v4  ;;  %1394 = vmatprep.subr.bf16.mxu0 (!%p1131_p13), %v1910_v13  ;;  %v1395_v18 = vpack.c.bf16 (!%p1131_p13), %v491_v17, %v490_v16  ;;  %vm1911_vm9 = vmmov (!%p1131_p13), 0   ;;  %v1912_v20 = vmov (!%p1131_p13), 0.0   ;;  %v685_v59 = vld [vmem:[#allocation12 + $0x50] sm:$0xff] (!%p1131_p13)  ;;  %v668_v63 = vld [vmem:[#allocation11 + $0x48] sm:$0xff] (!%p1131_p13)  ;;  %v687_v1 = vld [vmem:[#allocation12 + $0x60] sm:$0xff] (!%p1131_p13) }
  0xda   : > { %v476_v7 = vsel %vm475_vm7, %v449_v2, %v474_v6  ;;  %1232 = vmatprep.mubr.msk.f32.mxu0 (!%p1131_p13), %vm1911_vm9, %v1912_v20  ;;  %1251 = vmatprep.mubr.msk.f32.mxu1 (!%p1131_p13), %vm1911_vm9, %v1912_v20  ;;  %v1404_v21 = vpack.c.bf16 (!%p1131_p13), %v577_v15, %v576_v12  ;;  %v1398_v25 = vpack.c.bf16 (!%p1131_p13), %v493_v22, %v492_v19  ;;  %vm498_vm10 = vcmask (!%p1131_p13), 261120   ;;  %v688_v2 = vld [vmem:[#allocation12 + $0x68] sm:$0xff] (!%p1131_p13)  ;;  %v669_v4 = vld [vmem:[#allocation11 + $0x50] sm:$0xff] (!%p1131_p13)  ;;  %v674_v12 = vld [vmem:[#allocation11 + $0x78] sm:$0xff] (!%p1131_p13) }
  0xdb   : > { %v478_v8 = vsel %vm477_vm8, %v456_v3, %v476_v7  ;;  %1402 = vmatpush3.bf16.msra.mxu1 (!%p1131_p13), %v1401_v14  ;;  %1396 = vmatpush3.bf16.msra.mxu0 (!%p1131_p13), %v1395_v18  ;;  %v1407_v28 = vpack.c.bf16 (!%p1131_p13), %v579_v24, %v578_v23  ;;  %v2233_v32 = vpack.c.bf16 (!%p1131_p13), %v676_v27, %v675_v26  ;;  %v673_v11 = vld [vmem:[#allocation11 + $0x70] sm:$0xff] (!%p1131_p13)  ;;  %v690_v16 = vld [vmem:[#allocation12 + $0x78] sm:$0xff] (!%p1131_p13) }
  0xdc   : > { %v480_v9 = vadd.f32 %v478_v8, %v391_v5  ;;  %1403 = vmatprep.subr.bf16.mxu1 (!%p1131_p13), %v1910_v13  ;;  %1397 = vmatprep.subr.bf16.mxu0 (!%p1131_p13), %v1910_v13  ;;  %v1410_v35 = vpack.c.bf16 (!%p1131_p13), %v581_v30, %v580_v29  ;;  %v2238_v39 = vpack.c.bf16 (!%p1131_p13), %v678_v34, %v677_v33  ;;  %v670_v5 = vld [vmem:[#allocation11 + $0x58] sm:$0xff] (!%p1131_p13)  ;;  %v671_v8 = vld [vmem:[#allocation11 + $0x60] sm:$0xff] (!%p1131_p13)  ;;  %v689_v15 = vld [vmem:[#allocation12 + $0x70] sm:$0xff] (!%p1131_p13) }
  0xdd   : > { %v2243_v43 = vpack.c.bf16 (!%p1131_p13), %v660_v38, %v659_v37  ;;  %v2247_v46 = vpack.c.bf16 (!%p1131_p13), %v680_v41, %v679_v40  ;;  %v2252_v49 = vpack.c.bf16 (!%p1131_p13), %v662_v45, %v661_v44  ;;  %v2258_v52 = vpack.c.bf16 (!%p1131_p13), %v682_v48, %v681_v47  ;;  %v1132_v18 = vld [vmem:[%s2367_s6] ss:$0 sm:$0xff] (!%p1131_p13)  ;;  %v1134_v23 = vld [vmem:[%s2367_s6 + $0x1] ss:$0 sm:$0xff] (!%p1131_p13) }
  0xde   : > { %481 = vst.msk [vmem:[#allocation2] sm:$0xff] %vm400_vm1, %v480_v9  ;;  %v2262_v55 = vpack.c.bf16 (!%p1131_p13), %v664_v51, %v663_v50  ;;  %v2266_v58 = vpack.c.bf16 (!%p1131_p13), %v684_v54, %v683_v53  ;;  %v1446_v61 = vpack.c.bf16 (!%p1131_p13), %v666_v57, %v665_v56  ;;  %v2272_v0 = vpack.c.bf16 (!%p1131_p13), %v686_v60, %v685_v59  ;;  %v672_v9 = vld [vmem:[#allocation11 + $0x68] sm:$0xff] (!%p1131_p13) }
  0xdf   : > { %1405 = vmatpush3.bf16.msra.mxu1 %v1404_v21  ;;  %1399 = vmatpush3.bf16.msra.mxu0 %v1398_v25  ;;  %v1449_v3 = vpack.c.bf16 %v668_v63, %v667_v62  ;;  %v1431_v6 = vpack.c.bf16 %v688_v2, %v687_v1  ;;  %v1452_v7 = vpack.c.bf16 %v670_v5, %v669_v4 }
  0xe0   : > { %1406 = vmatprep.subr.bf16.mxu1 %v1910_v13  ;;  %1412 = vmatprep.subr.bf16.mxu0 %v1910_v13  ;;  %v1455_v10 = vpack.c.bf16 %v672_v9, %v671_v8  ;;  %v1458_v14 = vpack.c.bf16 %v674_v12, %v673_v11  ;;  %v1434_v17 = vpack.c.bf16 %v690_v16, %v689_v15 }
  0xe2   : > { %1233 = vmatmul.mubr.msk.f32.vlgmr.msra.gmra.mrb[0].mxu0 %vm498_vm10, %v489_v31 }
  0xe3   : > { %1408 = vmatpush3.bf16.msra.mxu1 %v1407_v28  ;;  %1414 = vmatpush3.bf16.msra.mxu0 %v2233_v32  ;;  %v1136_v28 = vld [vmem:[%s2367_s6 + $0x2] ss:$0 sm:$0xff] }
  0xe4   : > { %1409 = vmatprep.subr.bf16.mxu1 %v1910_v13  ;;  %1415 = vmatprep.subr.bf16.mxu0 %v1910_v13 }
  0xe5   : > { %v572_v36 = vld [vmem:[#allocation2] sm:$0xff]  ;;  %1286 = vmatprep.mubr.msk.f32.mxu0 %vm1911_vm9, %v1912_v20 }
  0xe6   : > { %v573_v42 = vmul.f32 0.0625, %v572_v36 }
  0xe7   : > { %1411 = vmatpush3.bf16.msra.mxu1 %v1410_v35  ;;  %1417 = vmatpush3.bf16.msra.mxu0 %v2238_v39 }
  0xe8   : > { %1436 = vmatprep.subr.bf16.mxu1 %v1910_v13  ;;  %1418 = vmatprep.subr.bf16.mxu0 %v1910_v13 }
  0xea   : > { %1252 = vmatmul.mubr.msk.f32.vlgmr.msra.gmra.mrb[0].mxu1 %vm400_vm1, %v573_v42 }
  0xeb   : > { %1438 = vmatpush3.bf16.msra.mxu1 %v2243_v43  ;;  %1321 = vmatprep.mubr.msk.f32.mxu1 %vm1911_vm9, %v1912_v20 }
  0xec   : > { %1439 = vmatprep.subr.bf16.mxu1 %v1910_v13  ;;  %1420 = vmatpush3.bf16.msra.mxu0 %v2247_v46 }
  0xed   : > { %1421 = vmatprep.subr.bf16.mxu0 %v1910_v13 }
  0xef   : > { %1441 = vmatpush3.bf16.msra.mxu1 %v2252_v49 }
  0xf0   : > { %1442 = vmatprep.subr.bf16.mxu1 %v1910_v13  ;;  %1423 = vmatpush3.bf16.msra.mxu0 %v2258_v52 }
  0xf1   : > { %1424 = vmatprep.subr.bf16.mxu0 %v1910_v13 }
  0xf3   : > { %1444 = vmatpush3.bf16.msra.mxu1 %v2262_v55 }
  0xf4   : > { %1445 = vmatprep.subr.bf16.mxu1 %v1910_v13  ;;  %1426 = vmatpush3.bf16.msra.mxu0 %v2266_v58 }
  0xf5   : > { %1427 = vmatprep.subr.bf16.mxu0 %v1910_v13 }
  0xf7   : > { %1447 = vmatpush3.bf16.msra.mxu1 %v1446_v61 }
  0xf8   : > { %1448 = vmatprep.subr.bf16.mxu1 %v1910_v13  ;;  %1429 = vmatpush3.bf16.msra.mxu0 %v2272_v0 }
  0xf9   : > { %1430 = vmatprep.subr.bf16.mxu0 %v1910_v13 }
  0xfb   : > { %1450 = vmatpush3.bf16.msra.mxu1 %v1449_v3 }
  0xfc   : > { %1451 = vmatprep.subr.bf16.mxu1 %v1910_v13  ;;  %1432 = vmatpush3.bf16.msra.mxu0 %v1431_v6 }
  0xfd   : > { %1433 = vmatprep.subr.bf16.mxu0 %v1910_v13 }
  0xff   : > { %1453 = vmatpush3.bf16.msra.mxu1 %v1452_v7 }
 0x100   : > { %1454 = vmatprep.subr.bf16.mxu1 %v1910_v13  ;;  %1435 = vmatpush3.bf16.msra.mxu0 %v1434_v17 }
 0x101   : > { %1460 = vmatprep.subr.bf16.mxu0 %v1910_v13 }
 0x103   : > { %1456 = vmatpush3.bf16.msra.mxu1 %v1455_v10 }
 0x104   : > { %1457 = vmatprep.subr.bf16.mxu1 %v1910_v13 }
 0x107   : > { %1459 = vmatpush3.bf16.msra.mxu1 %v1458_v14 }
 0x108   : > { %1484 = vmatprep.subr.bf16.mxu1 %v1910_v13 }
 0x1b5   : > { %v568_v19 = vpop.f32.mrb[0].mxu0 }
 0x1b6   : > { %v569_v21 = vadd.f32 %v1132_v18, %v568_v19  ;;  %v1234_v22 = vpop.f32.mrb[1].mxu0 }
 0x1b8   : > { %1322 = vmatmul.mubr.f32.vlgmr.msra.gmra.mrb[2].mxu1 %v569_v21 }
 0x1b9   : > { %1486 = vmatpush3.bf16.msra.mxu1 %v2243_v43  ;;  %1391 = vmatprep.mubr.msk.f32.mxu1 %vm1911_vm9, %v1912_v20 }
 0x1ba   : > { %1487 = vmatprep.subr.bf16.mxu1 %v1910_v13 }
 0x1bd   : > { %v655_v24 = vpop.f32.mrb[0].mxu1  ;;  %1489 = vmatpush3.bf16.msra.mxu1 %v2252_v49 }
 0x1be   : > { %v656_v25 = vadd.f32 %v1134_v23, %v655_v24  ;;  %v1253_v26 = vpop.f32.mrb[1].mxu1  ;;  %1490 = vmatprep.subr.bf16.mxu1 %v1910_v13 }
 0x1c0   : > { %1287 = vmatmul.mubr.f32.vlgmr.msra.gmra.mrb[2].mxu0 %v656_v25 }
 0x1c1   : > { %1462 = vmatpush3.bf16.msra.mxu0 %v2233_v32  ;;  %1356 = vmatprep.mubr.msk.f32.mxu0 %vm1911_vm9, %v1912_v20 }
 0x1c2   : > { %1463 = vmatprep.subr.bf16.mxu0 %v1910_v13  ;;  %1492 = vmatpush3.bf16.msra.mxu1 %v2262_v55 }
 0x1c3   : > { %1493 = vmatprep.subr.bf16.mxu1 %v1910_v13 }
 0x1c5   : > { %1465 = vmatpush3.bf16.msra.mxu0 %v2238_v39 }
 0x1c6   : > { %1466 = vmatprep.subr.bf16.mxu0 %v1910_v13  ;;  %1495 = vmatpush3.bf16.msra.mxu1 %v1446_v61 }
 0x1c7   : > { %1496 = vmatprep.subr.bf16.mxu1 %v1910_v13 }
 0x1c9   : > { %1468 = vmatpush3.bf16.msra.mxu0 %v2247_v46 }
 0x1ca   : > { %1469 = vmatprep.subr.bf16.mxu0 %v1910_v13  ;;  %1498 = vmatpush3.bf16.msra.mxu1 %v1449_v3 }
 0x1cb   : > { %1499 = vmatprep.subr.bf16.mxu1 %v1910_v13 }
 0x1cd   : > { %1471 = vmatpush3.bf16.msra.mxu0 %v2258_v52 }
 0x1ce   : > { %1472 = vmatprep.subr.bf16.mxu0 %v1910_v13  ;;  %1501 = vmatpush3.bf16.msra.mxu1 %v1452_v7 }
 0x1cf   : > { %1502 = vmatprep.subr.bf16.mxu1 %v1910_v13 }
 0x1d1   : > { %1474 = vmatpush3.bf16.msra.mxu0 %v2266_v58 }
 0x1d2   : > { %1475 = vmatprep.subr.bf16.mxu0 %v1910_v13  ;;  %1504 = vmatpush3.bf16.msra.mxu1 %v1455_v10 }
 0x1d3   : > { %1505 = vmatprep.subr.bf16.mxu1 %v1910_v13 }
 0x1d5   : > { %1477 = vmatpush3.bf16.msra.mxu0 %v2272_v0 }
 0x1d6   : > { %1478 = vmatprep.subr.bf16.mxu0 %v1910_v13  ;;  %1507 = vmatpush3.bf16.msra.mxu1 %v1458_v14 }
 0x1d9   : > { %1480 = vmatpush3.bf16.msra.mxu0 %v1431_v6 }
 0x1da   : > { %1481 = vmatprep.subr.bf16.mxu0 %v1910_v13 }
 0x1dd   : > { %1483 = vmatpush3.bf16.msra.mxu0 %v1434_v17 }
 0x28b   : > { %v827_v20 = vpop.f32.mrb[2].mxu1 }
 0x28c   : > { %v1323_v27 = vpop.f32.mrb[3].mxu1 }
 0x293   : > { %v757_v29 = vpop.f32.mrb[2].mxu0 }
 0x294   : > { %v828_v30 = vadd.f32 %v827_v20, %v757_v29  ;;  %v1288_v31 = vpop.f32.mrb[3].mxu0 }
 0x296   : > { %v835_v32 = vadd.f32 %v1136_v28, %v828_v30 }
 0x298   : > { %v1137_v33 = vmul.f32 -1.442695, %v835_v32 }
 0x29a   : > { %1628 = vpow2.f32 %v1137_v33 }
 0x2a4   : > { %v1629_v34 = vpop.eup %1628 }
 0x2a5   : > { %v839_v35 = vadd.f32 1.0, %v1629_v34 }
 0x2a7   : > { %1630 = vrcp.f32 %v839_v35 }
 0x2b1   : > { %v1631_v36 = vpop.eup %1630 }
 0x2b2   : > { %v842_v37 = vmul.f32 %v1631_v36, %v569_v21  ;;  %v844_v38 = vsub.f32 1.0, %v1631_v36 }
 0x2b4   : > { %v843_v13 = vmax.f32 %v842_v37, 0.0  ;;  %v845_v39 = vmul.f32 %v844_v38, %v656_v25 }
 0x2b6   : > { %1392 = vmatmul.mubr.f32.vlgmr.msra.gmra.mrb[4].mxu1 %v843_v13  ;;  %v846_v40 = vmax.f32 %v845_v39, 0.0 }
 0x2b8   : > { %1357 = vmatmul.mubr.f32.vlgmr.msra.gmra.mrb[4].mxu0 %v846_v40 }
 0x389   : > { %v983_v41 = vpop.f32.mrb[4].mxu1 }
 0x38a   : > { %v1393_v42 = vpop.f32.mrb[5].mxu1 }
 0x38b   : > { %v913_v43 = vpop.f32.mrb[4].mxu0 }
 0x38c   : > { %v984_v44 = vadd.f32 %v983_v41, %v913_v43  ;;  %v1358_v45 = vpop.f32.mrb[5].mxu0 }
 0x38e   : > { %v987_v46 = vadd.f32 %v1136_v28, %v984_v44 }
 0x390   : > { %988 = vst [vmem:[#allocation14] sm:$0xff] %v987_v46 }
 0x391 PF: > { %p1565_p2 = scmp.eq.s32.totalorder %s1983_s30, 1  ;;  %s1913_s12 = smov [#allocation14]  }
 0x392   : > { %s998_s13 = sshll.u32 %s1913_s12, 4  ;;  %s999_s13 = int_to_ptr.vmem [resolvable:$true] %s998_s13 }
 0x393   : > { %s1802_s15 = scalar_lea.vmem %s999_s13, 128  ;;  %p1809_p6 = scmp.lt.s32.totalorder %s999_s13, %s999_s13 }
 0x394   : > { %p1803_p3 = scmp.ne.s32.totalorder %s999_s13, %s1802_s15  ;;  %p1810_p9 = scmp.lt.s32.totalorder %s1802_s15, %s1802_s15 }
 0x396   : > { %p1804_p12 = pnand %p1803_p3, %p1565_p2  ;;  %p1811_p7 = por %p1810_p9, %p1809_p6 }
 0x398   : > { %p1805_p0 = pneg %p1804_p12 }
 0x39a   : > { %p1812_p1 = pnand %p1811_p7, %p1805_p0 }
 0x39c   : > { %1815 = shalt.err (!%p1812_p1)
}
 0x39d   : > { %s1816_s22 = scalar_lea.hbm %s2368_s7, 128 }
 0x39e   : > { %p1817_p4 = scmp.ne.s32.totalorder %s2368_s7, %s1816_s22  ;;  %p1822_p10 = scmp.lt.u32.totalorder %s1816_s22, %s2368_s7 }
 0x3a0   : > { %p1818_p5 = pnand %p1817_p4, %p1565_p2 }
 0x3a2   : > { %p1819_p8 = pneg %p1818_p5 }
 0x3a4   : > { %p1824_p11 = pnand %p1822_p10, %p1819_p8 }
 0x3a6   : > { %1827 = shalt.err (!%p1824_p11)
}
 0x3a7   : > { %1531 = dma.vmem_to_hbm [thread:$0]  (%p1565_p2), %s999_s13, 128, %s2368_s7, [#allocation5]  }
 0x3a8   : > { %1873 = dma.done.wait (%p1565_p2), [#allocation5], 128  }
 0x3a9   : > { %1875 = vsyncadd (%p1565_p2), [#allocation5], 4294967168 }
 0x3aa PF: > { %s24_s29 = sadd.s32 1, %s1898_s29   ;;  %s2391_s24 = smov %s1882_s25 }
 0x3ab   : > { %p21_p13 = scmp.ge.s32.totalorder %s24_s29, 4   ;;  %s2392_s25 = smov %s1886_s26 }
 0x3ac   : > { %s2393_s26 = smov %s2143_s11  ;;  %s2394_s27 = smov %s1894_s28 }
 0x3ad   : > { %s2395_s28 = smov %s2397_s20  ;;  %23 = sbr.rel (!%p21_p13) target bundleno = 10 (0xa), region = 116 }
 0x3b4   :  { %1011 = vsyncpa [#allocation4], 1 }
 0x3b5   :  { %1013 = vsyncpa [#allocation4 + $0x1], 1 }
 0x3b6   :  { %1014 = vsyncpa [#allocation7], 1 }
 0x3b7   :  { %1016 = vsyncpa [#allocation7 + $0x1], 1 }
 0x3b8   :  { %1017 = vsyncpa [#allocation10], 1 }
 0x3b9   :  { %1018 = vsyncpa [#allocation13], 1 }
 0x3ba   :  { %1019 = vsyncpa [#allocation5], 1 }
 0x3bb   :  { %1021 = vsyncpa [#allocation5 + $0x1], 1 }

// kernel: tpu_custom_call.1
= control target key start
LH: loop header
LB: loop body
LE: loop exit
PB: predicated region body
PF: predicated region fallthrough
CT: control target
= control target key end

     0   :  { %s2361_s0 = inlined_call_operand.hbm [shape: f32[8,32], index: 0, kind: input, shape index: {}]   ;;  %s2362_s1 = inlined_call_operand.hbm [shape: f32[8,16,64], index: 1, kind: input, shape index: {}]   ;;  %s2363_s2 = inlined_call_operand.hbm [shape: f32[32,128], index: 2, kind: input, shape index: {}]   ;;  %s2364_s3 = inlined_call_operand.hbm [shape: f32[64,128], index: 3, kind: input, shape index: {}]   ;;  %s2365_s4 = inlined_call_operand.hbm [shape: f32[128,128], index: 4, kind: input, shape index: {}]   ;;  %s2366_s5 = inlined_call_operand.hbm [shape: f32[128,128], index: 5, kind: input, shape index: {}]   ;;  %s2367_s6 = inlined_call_operand.vmem [shape: f32[3,128], index: 6, kind: input, shape index: {}]   ;;  %s2368_s7 = inlined_call_operand.hbm [shape: f32[8,128], index: 7, kind: output, shape index: {}]  }
   0x1   :  { %2373 = sst [smem:[#allocation21_spill]] %s2363_s2 }
   0x2   :  { %12 = vsyncpa [#allocation4], 0 }
   0x3   :  { %13 = vsyncpa [#allocation7], 0 }
   0x4   :  { %15 = vsyncpa [#allocation7 + $0x1], 0 }
   0x5   :  { %16 = vsyncpa [#allocation10], 0 }
   0x6   :  { %17 = vsyncpa [#allocation13], 0 }
   0x7   :  { %18 = vsyncpa [#allocation5], 0  ;;  %s1954_s24 = smov 0   ;;  %s1956_s25 = smov 0  }
   0x8   :  { %s1958_s26 = smov 0   ;;  %s1960_s27 = smov 0  }
   0x9   :  { %s1962_s28 = smov 0   ;;  %s1964_s29 = smov 0  }
   0xa LB: > { %s1983_s30 = sadd.s32 4294967295, %s1898_s29   ;;  %p84_p0 = scmp.ne.s32.totalorder %s1882_s25, %s1878_s24  ;;  %s1898_s29 = sphi %s1964_s29, %s24_s29   ;;  %s1894_s28 = sphi %s1962_s28, %s2395_s28   ;;  %s1890_s27 = sphi %s1960_s27, %s2394_s27   ;;  %s1886_s26 = sphi %s1958_s26, %s2393_s26   ;;  %s1882_s25 = sphi %s1956_s25, %s2392_s25   ;;  %s1878_s24 = sphi %s1954_s24, %s2391_s24  }
   0xb   : > { %p2369_p1 = scmp.eq.s32.totalorder %s1983_s30, 0  ;;  %p1114_p2 = scmp.ge.s32.totalorder %s1898_s29, 1 }
   0xc   : > { %p226_p3 = scmp.lt.s32.totalorder %s1898_s29, 3  ;;  %s1900_s10 = smov [#allocation8]  }
   0xd   : > { %p1991_p4 = por %p2369_p1, %p84_p0  ;;  %s251_s11 = sshll.u32 %s1900_s10, 4  ;;  %s252_s11 = int_to_ptr.vmem [resolvable:$true] %s251_s11 }
   0xe   : > { %p1995_p5 = pnand %p1114_p2, %p226_p3  ;;  %s1901_s13 = smov [#allocation9]  }
   0xf   : > { %s2374_s8 = scalar_select %p1991_p4, 1, 0 }
  0x10   : > { %s2375_s9 = scalar_select %p1995_p5, 1, 0 }
  0x11   : > { %p1534_p6 = pneg %p1995_p5  ;;  %s264_s14 = sshll.u32 %s1901_s13, 4  ;;  %s2007_s14 = int_to_ptr.vmem [resolvable:$true] %s264_s14 }
  0x12   : > { %s2377_s2 = sld [smem:[#allocation21_spill]] }
  0x13   : > { %p2003_p7 = pnand %p1534_p6, %p2369_p1 }
  0x15   : > { %p2017_p9 = pneg %p2003_p7 }
  0x18   : > { %s1632_s17 = scalar_lea.hbm %s2377_s2, 512 }
  0x19   : > { %p1633_p8 = scmp.ne.s32.totalorder %s2377_s2, %s1632_s17  ;;  %p1639_p12 = scmp.lt.u32.totalorder %s1632_s17, %s2377_s2 }
  0x1b   : > { %p1635_p10 = pnand %p2017_p9, %p1633_p8 }
  0x1d   : > { %p1636_p11 = pneg %p1635_p10 }
  0x1f   : > { %p1641_p13 = pnand %p1639_p12, %p1636_p11 }
  0x21   : > { %1644 = shalt.err (!%p1641_p13)
}
  0x22   : > { %s1645_s23 = scalar_lea.vmem %s252_s11, 512  ;;  %p1653_p6 = scmp.lt.s32.totalorder %s252_s11, %s252_s11 }
  0x23   : > { %p1646_p0 = scmp.ne.s32.totalorder %s252_s11, %s1645_s23  ;;  %p1654_p1 = scmp.lt.s32.totalorder %s1645_s23, %s1645_s23 }
  0x25   : > { %p1648_p2 = pnand %p1646_p0, %p2017_p9  ;;  %p1655_p4 = por %p1654_p1, %p1653_p6 }
  0x27   : > { %p1649_p3 = pneg %p1648_p2 }
  0x29   : > { %p1656_p5 = pnand %p1655_p4, %p1649_p3 }
  0x2b   : > { %1659 = shalt.err (!%p1656_p5)
}
  0x2c   : > { %s2372_s24 = smov 128   ;;  %s1903_s10 = smov 8  }
  0x2d   : > { %1540 = dma.hbm_to_vmem [thread:$0]  (!%p2003_p7), %s2377_s2, 512, %s252_s11, [#allocation7], %s2372_s24, %s2372_s24, %s1903_s10  }
  0x2e   : > { %s1660_s18 = scalar_lea.hbm %s2364_s3, 1024 }
  0x2f   : > { %p1661_p1 = scmp.ne.s32.totalorder %s2364_s3, %s1660_s18  ;;  %p1667_p8 = scmp.lt.u32.totalorder %s1660_s18, %s2364_s3 }
  0x31   : > { %p1663_p4 = pnand %p1661_p1, %p2017_p9 }
  0x33   : > { %p1664_p5 = pneg %p1663_p4 }
  0x35   : > { %p1669_p10 = pnand %p1667_p8, %p1664_p5 }
  0x37   : > { %1672 = shalt.err (!%p1669_p10)
}
  0x38   : > { %s1673_s11 = scalar_lea.vmem %s2007_s14, 1024  ;;  %p1681_p0 = scmp.lt.s32.totalorder %s2007_s14, %s2007_s14 }
  0x39   : > { %p1674_p11 = scmp.ne.s32.totalorder %s2007_s14, %s1673_s11  ;;  %p1682_p2 = scmp.lt.s32.totalorder %s1673_s11, %s1673_s11 }
  0x3b   : > { %p1676_p12 = pnand %p1674_p11, %p2017_p9  ;;  %p1683_p3 = por %p1682_p2, %p1681_p0 }
  0x3d   : > { %p1677_p13 = pneg %p1676_p12 }
  0x3f   : > { %p1684_p6 = pnand %p1683_p3, %p1677_p13 }
  0x41   : > { %1687 = shalt.err (!%p1684_p6)
}
  0x42   : > { %1543 = dma.hbm_to_vmem [thread:$0]  (!%p2003_p7), %s2364_s3, 1024, %s2007_s14, [#allocation10], %s2372_s24, %s2372_s24, %s1903_s10  }
  0x43   : > { %s1904_s16 = smov [#allocation3]   ;;  %s1905_s18 = smov [#allocation11]  }
  0x44   : > { %s241_s17 = sshll.u32 %s1904_s16, 4  ;;  %s277_s19 = sshll.u32 %s1905_s18, 4  ;;  %s242_s17 = int_to_ptr.vmem [resolvable:$true] %s241_s17  ;;  %s2062_s19 = int_to_ptr.vmem [resolvable:$true] %s277_s19 }
  0x45   : > { %s1688_s23 = scalar_lea.hbm %s2361_s0, 128 }
  0x46   : > { %p1689_p1 = scmp.ne.s32.totalorder %s2361_s0, %s1688_s23  ;;  %p1695_p8 = scmp.lt.u32.totalorder %s1688_s23, %s2361_s0 }
  0x48   : > { %p1691_p4 = pnand %p1689_p1, %p2017_p9 }
  0x4a   : > { %p1692_p5 = pneg %p1691_p4 }
  0x4c   : > { %p1697_p10 = pnand %p1695_p8, %p1692_p5 }
  0x4e   : > { %1700 = shalt.err (!%p1697_p10)
}
  0x4f   : > { %s1701_s15 = scalar_lea.vmem %s242_s17, 128  ;;  %p1709_p0 = scmp.lt.s32.totalorder %s242_s17, %s242_s17 }
  0x50   : > { %p1702_p11 = scmp.ne.s32.totalorder %s242_s17, %s1701_s15  ;;  %p1710_p2 = scmp.lt.s32.totalorder %s1701_s15, %s1701_s15 }
  0x52   : > { %p1704_p12 = pnand %p1702_p11, %p2017_p9  ;;  %p1711_p3 = por %p1710_p2, %p1709_p0 }
  0x54   : > { %p1705_p13 = pneg %p1704_p12 }
  0x56   : > { %p1712_p6 = pnand %p1711_p3, %p1705_p13 }
  0x58   : > { %1715 = shalt.err (!%p1712_p6)
}
  0x59   : > { %1537 = dma.hbm_to_vmem [thread:$0]  (!%p2003_p7), %s2361_s0, 128, %s242_s17, [#allocation4]  }
  0x5a   : > { %s1716_s22 = scalar_lea.hbm %s2365_s4, 2048 }
  0x5b   : > { %p1717_p1 = scmp.ne.s32.totalorder %s2365_s4, %s1716_s22  ;;  %p1723_p8 = scmp.lt.u32.totalorder %s1716_s22, %s2365_s4 }
  0x5d   : > { %p1719_p4 = pnand %p1717_p1, %p2017_p9 }
  0x5f   : > { %p1720_p5 = pneg %p1719_p4 }
  0x61   : > { %p1725_p10 = pnand %p1723_p8, %p1720_p5 }
  0x63   : > { %1728 = shalt.err (!%p1725_p10)
}
  0x64   : > { %s1729_s17 = scalar_lea.vmem %s2062_s19, 2048  ;;  %p1737_p0 = scmp.lt.s32.totalorder %s2062_s19, %s2062_s19 }
  0x65   : > { %p1730_p11 = scmp.ne.s32.totalorder %s2062_s19, %s1729_s17  ;;  %p1738_p2 = scmp.lt.s32.totalorder %s1729_s17, %s1729_s17 }
  0x67   : > { %p1732_p12 = pnand %p1730_p11, %p2017_p9  ;;  %p1739_p3 = por %p1738_p2, %p1737_p0 }
  0x69   : > { %p1733_p13 = pneg %p1732_p12 }
  0x6b   : > { %p1740_p6 = pnand %p1739_p3, %p1733_p13 }
  0x6d   : > { %1743 = shalt.err (!%p1740_p6)
}
  0x6e   : > { %1546 = dma.hbm_to_vmem [thread:$0]  (!%p2003_p7), %s2365_s4, 2048, %s2062_s19, [#allocation10], %s2372_s24, %s2372_s24, %s1903_s10  }
  0x6f   : > { %s1906_s16 = smov [#allocation12]   ;;  %s1744_s23 = scalar_lea.hbm %s2366_s5, 2048 }
  0x70   : > { %s290_s18 = sshll.u32 %s1906_s16, 4  ;;  %p1745_p1 = scmp.ne.s32.totalorder %s2366_s5, %s1744_s23  ;;  %s291_s18 = int_to_ptr.vmem [resolvable:$true] %s290_s18 }
  0x71   : > { %p1751_p8 = scmp.lt.u32.totalorder %s1744_s23, %s2366_s5 }
  0x72   : > { %p1747_p4 = pnand %p1745_p1, %p2017_p9 }
  0x74   : > { %p1748_p5 = pneg %p1747_p4 }
  0x76   : > { %p1753_p10 = pnand %p1751_p8, %p1748_p5 }
  0x78   : > { %1756 = shalt.err (!%p1753_p10)
}
  0x79   : > { %s1757_s19 = scalar_lea.vmem %s291_s18, 2048  ;;  %p1765_p0 = scmp.lt.s32.totalorder %s291_s18, %s291_s18 }
  0x7a   : > { %p1758_p11 = scmp.ne.s32.totalorder %s291_s18, %s1757_s19  ;;  %p1766_p2 = scmp.lt.s32.totalorder %s1757_s19, %s1757_s19 }
  0x7c   : > { %p1760_p12 = pnand %p1758_p11, %p2017_p9  ;;  %p1767_p3 = por %p1766_p2, %p1765_p0 }
  0x7e   : > { %p1761_p13 = pneg %p1760_p12 }
  0x80   : > { %p1768_p6 = pnand %p1767_p3, %p1761_p13 }
  0x82   : > { %1771 = shalt.err (!%p1768_p6)
}
  0x83   : > { %1549 = dma.hbm_to_vmem [thread:$0]  (!%p2003_p7), %s2366_s5, 2048, %s291_s18, [#allocation13], %s2372_s24, %s2372_s24, %s1903_s10  }
  0x84   : > { %s33_s20 = sadd.s32 1, %s1894_s28  ;;  %s71_s12 = sadd.s32 1, %s1886_s26 }
  0x85   : > { %p34_p9 = scmp.ge.s32.totalorder %s33_s20, 2  ;;  %p78_p1 = scmp.ne.s32.totalorder %s1886_s26, %s1882_s25 }
  0x86   : > { %p79_p4 = scmp.eq.s32.totalorder %s1898_s29, 0  ;;  %p1559_p8 = scmp.lt.s32.totalorder %s1898_s29, 2 }
  0x87   : > { %s2397_s20 = smov (%p34_p9, %s33_s20), 0  ;;  %s307_s21 = sand.u32 1, %s1898_s29  }
  0x88   : > { %p80_p5 = por %p79_p4, %p78_p1  ;;  %s67_s16 = ssub.s32 %s1894_s28, %s2397_s20 }
  0x89   : > { %p69_p10 = scmp.eq.s32.totalorder %s67_s16, 0  ;;  %s309_s22 = sand.u32 1, %s1886_s26  }
  0x8a   : > { %s1122_s23 = sshll.u32 %s1894_s28, 7  ;;  %s1121_s13 = sshll.u32 %s309_s22, 6 }
  0x8b   : > { %s2143_s11 = scalar_select %p69_p10, %s1886_s26, %s71_s12  }
  0x8c   : > { %s2148_s17 = scalar_lea.hbm %s2362_s1, %s1122_s23  ;;  %p2150_p7 = pnand %p1559_p8, %p80_p5 }
  0x8d   : > { %s311_s15 = scalar_lea.vmem [#allocation6], %s1121_s13  ;;  %s2156_s12 = scalar_lea.sflag [#allocation7], %s307_s21 }
  0x8e   : > { %s320_s2 = sshll.u32 %s311_s15, 4  ;;  %s1772_s16 = scalar_lea.hbm %s2148_s17, 1024  ;;  %s2154_s2 = int_to_ptr.vmem [resolvable:$true] %s320_s2 }
  0x8f   : > { %p1773_p11 = scmp.ne.s32.totalorder %s2148_s17, %s1772_s16  ;;  %p1774_p12 = pneg %p2150_p7 }
  0x90   : > { %s1777_s14 = scalar_lea.hbm %s2362_s1, 2048  ;;  %p1778_p2 = scmp.lt.u32.totalorder %s2148_s17, %s2362_s1 }
  0x91   : > { %p1775_p13 = pnand %p1774_p12, %p1773_p11  ;;  %p1779_p3 = scmp.lt.u32.totalorder %s1777_s14, %s1772_s16 }
  0x92   : > { %p1781_p9 = scmp.lt.u32.totalorder %s1772_s16, %s2148_s17 }
  0x93   : > { %p1776_p0 = pneg %p1775_p13  ;;  %p1780_p6 = por %p1779_p3, %p1778_p2 }
  0x95   : > { %p1782_p1 = por %p1781_p9, %p1780_p6 }
  0x97   : > { %p1783_p4 = pnand %p1782_p1, %p1776_p0 }
  0x99   : > { %1786 = shalt.err (!%p1783_p4)
}
  0x9a   : > { %s1787_s21 = scalar_lea.vmem %s2154_s2, 1024  ;;  %s1907_s13 = smov [#allocation6]  }
  0x9b   : > { %p1788_p5 = scmp.ne.s32.totalorder %s2154_s2, %s1787_s21  ;;  %s1792_s15 = sshll.u32 %s1907_s13, 4  ;;  %s1793_s15 = int_to_ptr.vmem [resolvable:$false] %s1792_s15 }
  0x9c   : > { %s1794_s24 = scalar_lea.vmem %s1793_s15, 2048  ;;  %p1795_p11 = scmp.lt.s32.totalorder %s2154_s2, %s1793_s15 }
  0x9d   : > { %p1790_p8 = pnand %p1788_p5, %p1774_p12  ;;  %p1796_p13 = scmp.lt.s32.totalorder %s1794_s24, %s1787_s21 }
  0x9f   : > { %p1791_p10 = pneg %p1790_p8  ;;  %p1797_p2 = por %p1796_p13, %p1795_p11 }
  0xa1   : > { %p1798_p3 = pnand %p1797_p2, %p1791_p10 }
  0xa3   : > { %1801 = shalt.err (!%p1798_p3)
}
  0xa4   : > { %s1908_s16 = smov 256   ;;  %s2380_s22 = smov 128  }
  0xa5   : > { %1553 = dma.hbm_to_vmem [thread:$0]  (!%p2150_p7), %s2148_s17, 1024, %s2154_s2, %s2156_s12, %s1908_s16, %s2380_s22, %s1903_s10  }
  0xa6   : > { %p2381_p12 = scmp.ne.s32.totalorder %s2375_s9, 0 }
  0xa7   : > { %p2382_p0 = scmp.eq.s32.totalorder (!%p2381_p12), %s1983_s30, 0 }
  0xa8   : > { %332 = sbr.rel (%p2381_p12) target bundleno = 938 (0x3aa), region = 48 }
  0xaf   : > { %1853 = dma.done.wait (%p2382_p0), [#allocation4], 128   ;;  %p2383_p6 = pmov %p2382_p0 }
  0xb0   : > { %s338_s23 = sand.u32 1, %s1983_s30   ;;  %s340_s19 = sand.u32 1, %s1882_s25  }
  0xb1   : > { %1855 = vsyncadd (%p2383_p6), [#allocation4], 4294967168  ;;  %s1125_s14 = sshll.u32 %s340_s19, 6  ;;  %s339_s18 = scalar_lea.sflag [#allocation7], %s338_s23 }
  0xb2   : > { %s342_s21 = scalar_lea.vmem [#allocation6], %s1125_s14  ;;  %p2384_p9 = scmp.ne.s32.totalorder %s2374_s8, 0 }
  0xb4   : > { %1857 = dma.done.wait (%p2384_p9), %s339_s18, 1024  }
  0xb5   : > { %1859 = vsyncadd (%p2384_p9), %s339_s18, 4294966272  ;;  %p2385_p7 = pmov %p2382_p0 }
  0xb6   : > { %p2386_p1 = pmov %p2382_p0 }
  0xb7   : > { %1861 = dma.done.wait (%p2385_p7), [#allocation7], 512  }
  0xb8   : > { %1863 = vsyncadd (%p2386_p1), [#allocation7], 4294966784  ;;  %p2387_p4 = pmov %p2382_p0 }
  0xb9   : > { %p2388_p5 = pmov %p2382_p0 }
  0xba   : > { %1865 = dma.done.wait (%p2387_p4), [#allocation10], 3072  }
  0xbb   : > { %1867 = vsyncadd (%p2388_p5), [#allocation10], 4294964224  ;;  %p2389_p8 = pmov %p2382_p0 }
  0xbc   : > { %p2390_p10 = pmov %p2382_p0 }
  0xbd   : > { %1869 = dma.done.wait (%p2389_p8), [#allocation13], 2048  }
  0xbe   : > { %1871 = vsyncadd (%p2390_p10), [#allocation13], 4294965248  ;;  %p1130_p11 = scmp.ne.s32.totalorder %s1890_s27, 0 }
  0xbf   : > { %vm389_vm0 = vcmask (!%p1130_p11), 523264   ;;  %v1909_v0 = vmov (!%p1130_p11), 0.0  }
  0xc0   : > { %388 = sbr.rel (%p1130_p11) target bundleno = 199 (0xc7), region = 76  ;;  %390 = vst.msk [vmem:[#allocation2] sm:$0xff] (!%p1130_p11), %vm389_vm0, %v1909_v0 }
  0xc7 PF: > { %v392_v1 = vld [vmem:[%s342_s21] sm:$0xff]  ;;  %v393_v2 = vld [vmem:[%s342_s21 + $0x8] sm:$0xff]  ;;  %vm400_vm1 = vcmask 523264   ;;  %v394_v3 = vld [vmem:[%s342_s21 + $0x10] sm:$0xff]  ;;  %vm465_vm2 = vcmask 1041409   ;;  %vm467_vm3 = vcmask 1042434  }
  0xc8   : > { %v395_v4 = vld [vmem:[%s342_s21 + $0x18] sm:$0xff]  ;;  %v396_v5 = vld [vmem:[%s342_s21 + $0x20] sm:$0xff]  ;;  %v401_v6 = vsel %vm400_vm1, %v392_v1, 0.0  ;;  %v408_v7 = vsel %vm400_vm1, %v393_v2, 0.0  ;;  %v397_v8 = vld [vmem:[%s342_s21 + $0x28] sm:$0xff]  ;;  %v415_v13 = vsel %vm400_vm1, %v394_v3, 0.0 }
  0xc9   : > { %v398_v9 = vld [vmem:[%s342_s21 + $0x30] sm:$0xff]  ;;  %v399_v10 = vld [vmem:[%s342_s21 + $0x38] sm:$0xff]  ;;  %v402_v11 = vrot.slane %v401_v6, 4  ;;  %v409_v12 = vrot.slane %v408_v7, 4  ;;  %v416_v14 = vrot.slane %v415_v13, 4  ;;  %v422_v15 = vsel %vm400_vm1, %v395_v4, 0.0 }
  0xca   : > { %v429_v16 = vsel %vm400_vm1, %v396_v5, 0.0  ;;  %v436_v17 = vsel %vm400_vm1, %v397_v8, 0.0  ;;  %v423_v20 = vrot.slane %v422_v15, 4  ;;  %v443_v24 = vsel %vm400_vm1, %v398_v9, 0.0  ;;  %v391_v5 = vld [vmem:[#allocation2] sm:$0xff]  ;;  %p1131_p13 = scmp.ne.s32.totalorder %s1890_s27, 1 }
  0xcb   : > { %v403_v18 = vadd.f32 %v402_v11, %v401_v6  ;;  %v410_v19 = vadd.f32 %v409_v12, %v408_v7  ;;  %v430_v21 = vrot.slane %v429_v16, 4  ;;  %v417_v22 = vadd.f32 %v416_v14, %v415_v13  ;;  %v575_v11 = vld [vmem:[#allocation9 + $0x8] sm:$0xff] (!%p1131_p13)  ;;  %v576_v12 = vld [vmem:[#allocation9 + $0x10] sm:$0xff] (!%p1131_p13) }
  0xcc   : > { %v437_v23 = vrot.slane %v436_v17, 4  ;;  %v450_v25 = vsel %vm400_vm1, %v399_v10, 0.0  ;;  %vm469_vm4 = vcmask 1043459   ;;  %v424_v28 = vadd.f32 %v423_v20, %v422_v15  ;;  %v574_v10 = vld [vmem:[#allocation9] sm:$0xff] (!%p1131_p13)  ;;  %v577_v15 = vld [vmem:[#allocation9 + $0x18] sm:$0xff] (!%p1131_p13) }
  0xcd   : > { %v404_v26 = vrot.slane %v403_v18, 2  ;;  %v411_v27 = vrot.slane %v410_v19, 2  ;;  %v431_v29 = vadd.f32 %v430_v21, %v429_v16  ;;  %v418_v30 = vrot.slane %v417_v22, 2  ;;  %v490_v16 = vld [vmem:[#allocation8] sm:$0xff] (!%p1131_p13) }
  0xce   : > { %v438_v31 = vadd.f32 %v437_v23, %v436_v17  ;;  %v444_v32 = vrot.slane %v443_v24, 4  ;;  %v451_v33 = vrot.slane %v450_v25, 4  ;;  %v425_v36 = vrot.slane %v424_v28, 2  ;;  %v491_v17 = vld [vmem:[#allocation8 + $0x8] sm:$0xff] (!%p1131_p13)  ;;  %v578_v23 = vld [vmem:[#allocation9 + $0x20] sm:$0xff] (!%p1131_p13) }
  0xcf   : > { %v405_v34 = vadd.f32 %v404_v26, %v403_v18  ;;  %v412_v35 = vadd.f32 %v411_v27, %v410_v19  ;;  %v432_v37 = vrot.slane %v431_v29, 2  ;;  %v419_v38 = vadd.f32 %v418_v30, %v417_v22  ;;  %v492_v19 = vld [vmem:[#allocation8 + $0x10] sm:$0xff] (!%p1131_p13)  ;;  %v493_v22 = vld [vmem:[#allocation8 + $0x18] sm:$0xff] (!%p1131_p13)  ;;  %v675_v26 = vld [vmem:[#allocation12] sm:$0xff] (!%p1131_p13) }
  0xd0   : > { %v439_v39 = vrot.slane %v438_v31, 2  ;;  %v445_v40 = vadd.f32 %v444_v32, %v443_v24  ;;  %v452_v41 = vadd.f32 %v451_v33, %v450_v25  ;;  %v426_v44 = vadd.f32 %v425_v36, %v424_v28  ;;  %v579_v24 = vld [vmem:[#allocation9 + $0x28] sm:$0xff] (!%p1131_p13)  ;;  %v581_v30 = vld [vmem:[#allocation9 + $0x38] sm:$0xff] (!%p1131_p13)  ;;  %v677_v33 = vld [vmem:[#allocation12 + $0x10] sm:$0xff] (!%p1131_p13) }
  0xd1   : > { %v406_v42 = vrot.slane %v405_v34, 1  ;;  %v413_v43 = vrot.slane %v412_v35, 1  ;;  %v433_v45 = vadd.f32 %v432_v37, %v431_v29  ;;  %v420_v46 = vrot.slane %v419_v38, 1  ;;  %v676_v27 = vld [vmem:[#allocation12 + $0x8] sm:$0xff] (!%p1131_p13)  ;;  %v580_v29 = vld [vmem:[#allocation9 + $0x30] sm:$0xff] (!%p1131_p13)  ;;  %v659_v37 = vld [vmem:[#allocation11] sm:$0xff] (!%p1131_p13) }
  0xd2   : > { %v440_v47 = vadd.f32 %v439_v39, %v438_v31  ;;  %v446_v48 = vrot.slane %v445_v40, 2  ;;  %v453_v49 = vrot.slane %v452_v41, 2  ;;  %v427_v52 = vrot.slane %v426_v44, 1  ;;  %v489_v31 = vld [vmem:[#allocation3] sm:$0xff] (!%p1131_p13) }
  0xd3   : > { %v407_v50 = vadd.f32 %v406_v42, %v405_v34  ;;  %v414_v51 = vadd.f32 %v413_v43, %v412_v35  ;;  %v434_v53 = vrot.slane %v433_v45, 1  ;;  %v421_v54 = vadd.f32 %v420_v46, %v419_v38  ;;  %v678_v34 = vld [vmem:[#allocation12 + $0x18] sm:$0xff] (!%p1131_p13)  ;;  %v660_v38 = vld [vmem:[#allocation11 + $0x8] sm:$0xff] (!%p1131_p13) }
  0xd4   : > { %v441_v55 = vrot.slane %v440_v47, 1  ;;  %v447_v56 = vadd.f32 %v446_v48, %v445_v40  ;;  %v454_v57 = vadd.f32 %v453_v49, %v452_v41  ;;  %v428_v58 = vadd.f32 %v427_v52, %v426_v44  ;;  %v679_v40 = vld [vmem:[#allocation12 + $0x20] sm:$0xff] (!%p1131_p13)  ;;  %v680_v41 = vld [vmem:[#allocation12 + $0x28] sm:$0xff] (!%p1131_p13)  ;;  %v661_v44 = vld [vmem:[#allocation11 + $0x10] sm:$0xff] (!%p1131_p13) }
  0xd5   : > { %v435_v59 = vadd.f32 %v434_v53, %v433_v45  ;;  %v466_v60 = vsel %vm465_vm2, %v414_v51, %v407_v50  ;;  %vm471_vm5 = vcmask 1044484   ;;  %vm473_vm6 = vcmask 1045509   ;;  %v662_v45 = vld [vmem:[#allocation11 + $0x18] sm:$0xff] (!%p1131_p13)  ;;  %v663_v50 = vld [vmem:[#allocation11 + $0x20] sm:$0xff] (!%p1131_p13)  ;;  %v664_v51 = vld [vmem:[#allocation11 + $0x28] sm:$0xff] (!%p1131_p13) }
  0xd6   : > { %v442_v61 = vadd.f32 %v441_v55, %v440_v47  ;;  %v448_v62 = vrot.slane %v447_v56, 1  ;;  %v455_v63 = vrot.slane %v454_v57, 1  ;;  %v468_v0 = vsel %vm467_vm3, %v421_v54, %v466_v60  ;;  %v681_v47 = vld [vmem:[#allocation12 + $0x30] sm:$0xff] (!%p1131_p13)  ;;  %v682_v48 = vld [vmem:[#allocation12 + $0x38] sm:$0xff] (!%p1131_p13)  ;;  %v683_v53 = vld [vmem:[#allocation12 + $0x40] sm:$0xff] (!%p1131_p13) }
  0xd7   : > { %v470_v1 = vsel %vm469_vm4, %v428_v58, %v468_v0  ;;  %vm475_vm7 = vcmask 1046534   ;;  %vm477_vm8 = vcmask 1047559   ;;  %v1910_v13 = vmov (!%p1131_p13), 0.0|0.0   ;;  %v684_v54 = vld [vmem:[#allocation12 + $0x48] sm:$0xff] (!%p1131_p13)  ;;  %v686_v60 = vld [vmem:[#allocation12 + $0x58] sm:$0xff] (!%p1131_p13) }
  0xd8   : > { %v449_v2 = vadd.f32 %v448_v62, %v447_v56  ;;  %v456_v3 = vadd.f32 %v455_v63, %v454_v57  ;;  %v472_v4 = vsel %vm471_vm5, %v435_v59, %v470_v1  ;;  %485 = sbr.rel (%p1131_p13) target bundleno = 913 (0x391), region = 80  ;;  %1400 = vmatprep.subr.bf16.mxu1 (!%p1131_p13), %v1910_v13  ;;  %v1401_v14 = vpack.c.bf16 (!%p1131_p13), %v575_v11, %v574_v10  ;;  %v665_v56 = vld [vmem:[#allocation11 + $0x30] sm:$0xff] (!%p1131_p13)  ;;  %v666_v57 = vld [vmem:[#allocation11 + $0x38] sm:$0xff] (!%p1131_p13)  ;;  %v667_v62 = vld [vmem:[#allocation11 + $0x40] sm:$0xff] (!%p1131_p13) }
  0xd9   : > { %v474_v6 = vsel %vm473_vm6, %v442_v61, %v472_v4  ;;  %1394 = vmatprep.subr.bf16.mxu0 (!%p1131_p13), %v1910_v13  ;;  %v1395_v18 = vpack.c.bf16 (!%p1131_p13), %v491_v17, %v490_v16  ;;  %vm1911_vm9 = vmmov (!%p1131_p13), 0   ;;  %v1912_v20 = vmov (!%p1131_p13), 0.0   ;;  %v685_v59 = vld [vmem:[#allocation12 + $0x50] sm:$0xff] (!%p1131_p13)  ;;  %v668_v63 = vld [vmem:[#allocation11 + $0x48] sm:$0xff] (!%p1131_p13)  ;;  %v687_v1 = vld [vmem:[#allocation12 + $0x60] sm:$0xff] (!%p1131_p13) }
  0xda   : > { %v476_v7 = vsel %vm475_vm7, %v449_v2, %v474_v6  ;;  %1232 = vmatprep.mubr.msk.f32.mxu0 (!%p1131_p13), %vm1911_vm9, %v1912_v20  ;;  %1251 = vmatprep.mubr.msk.f32.mxu1 (!%p1131_p13), %vm1911_vm9, %v1912_v20  ;;  %v1404_v21 = vpack.c.bf16 (!%p1131_p13), %v577_v15, %v576_v12  ;;  %v1398_v25 = vpack.c.bf16 (!%p1131_p13), %v493_v22, %v492_v19  ;;  %vm498_vm10 = vcmask (!%p1131_p13), 261120   ;;  %v688_v2 = vld [vmem:[#allocation12 + $0x68] sm:$0xff] (!%p1131_p13)  ;;  %v669_v4 = vld [vmem:[#allocation11 + $0x50] sm:$0xff] (!%p1131_p13)  ;;  %v674_v12 = vld [vmem:[#allocation11 + $0x78] sm:$0xff] (!%p1131_p13) }
  0xdb   : > { %v478_v8 = vsel %vm477_vm8, %v456_v3, %v476_v7  ;;  %1402 = vmatpush3.bf16.msra.mxu1 (!%p1131_p13), %v1401_v14  ;;  %1396 = vmatpush3.bf16.msra.mxu0 (!%p1131_p13), %v1395_v18  ;;  %v1407_v28 = vpack.c.bf16 (!%p1131_p13), %v579_v24, %v578_v23  ;;  %v2233_v32 = vpack.c.bf16 (!%p1131_p13), %v676_v27, %v675_v26  ;;  %v673_v11 = vld [vmem:[#allocation11 + $0x70] sm:$0xff] (!%p1131_p13)  ;;  %v690_v16 = vld [vmem:[#allocation12 + $0x78] sm:$0xff] (!%p1131_p13) }
  0xdc   : > { %v480_v9 = vadd.f32 %v478_v8, %v391_v5  ;;  %1403 = vmatprep.subr.bf16.mxu1 (!%p1131_p13), %v1910_v13  ;;  %1397 = vmatprep.subr.bf16.mxu0 (!%p1131_p13), %v1910_v13  ;;  %v1410_v35 = vpack.c.bf16 (!%p1131_p13), %v581_v30, %v580_v29  ;;  %v2238_v39 = vpack.c.bf16 (!%p1131_p13), %v678_v34, %v677_v33  ;;  %v670_v5 = vld [vmem:[#allocation11 + $0x58] sm:$0xff] (!%p1131_p13)  ;;  %v671_v8 = vld [vmem:[#allocation11 + $0x60] sm:$0xff] (!%p1131_p13)  ;;  %v689_v15 = vld [vmem:[#allocation12 + $0x70] sm:$0xff] (!%p1131_p13) }
  0xdd   : > { %v2243_v43 = vpack.c.bf16 (!%p1131_p13), %v660_v38, %v659_v37  ;;  %v2247_v46 = vpack.c.bf16 (!%p1131_p13), %v680_v41, %v679_v40  ;;  %v2252_v49 = vpack.c.bf16 (!%p1131_p13), %v662_v45, %v661_v44  ;;  %v2258_v52 = vpack.c.bf16 (!%p1131_p13), %v682_v48, %v681_v47  ;;  %v1132_v18 = vld [vmem:[%s2367_s6] ss:$0 sm:$0xff] (!%p1131_p13)  ;;  %v1134_v23 = vld [vmem:[%s2367_s6 + $0x1] ss:$0 sm:$0xff] (!%p1131_p13) }
  0xde   : > { %481 = vst.msk [vmem:[#allocation2] sm:$0xff] %vm400_vm1, %v480_v9  ;;  %v2262_v55 = vpack.c.bf16 (!%p1131_p13), %v664_v51, %v663_v50  ;;  %v2266_v58 = vpack.c.bf16 (!%p1131_p13), %v684_v54, %v683_v53  ;;  %v1446_v61 = vpack.c.bf16 (!%p1131_p13), %v666_v57, %v665_v56  ;;  %v2272_v0 = vpack.c.bf16 (!%p1131_p13), %v686_v60, %v685_v59  ;;  %v672_v9 = vld [vmem:[#allocation11 + $0x68] sm:$0xff] (!%p1131_p13) }
  0xdf   : > { %1405 = vmatpush3.bf16.msra.mxu1 %v1404_v21  ;;  %1399 = vmatpush3.bf16.msra.mxu0 %v1398_v25  ;;  %v1449_v3 = vpack.c.bf16 %v668_v63, %v667_v62  ;;  %v1431_v6 = vpack.c.bf16 %v688_v2, %v687_v1  ;;  %v1452_v7 = vpack.c.bf16 %v670_v5, %v669_v4 }
  0xe0   : > { %1406 = vmatprep.subr.bf16.mxu1 %v1910_v13  ;;  %1412 = vmatprep.subr.bf16.mxu0 %v1910_v13  ;;  %v1455_v10 = vpack.c.bf16 %v672_v9, %v671_v8  ;;  %v1458_v14 = vpack.c.bf16 %v674_v12, %v673_v11  ;;  %v1434_v17 = vpack.c.bf16 %v690_v16, %v689_v15 }
  0xe2   : > { %1233 = vmatmul.mubr.msk.f32.vlgmr.msra.gmra.mrb[0].mxu0 %vm498_vm10, %v489_v31 }
  0xe3   : > { %1408 = vmatpush3.bf16.msra.mxu1 %v1407_v28  ;;  %1414 = vmatpush3.bf16.msra.mxu0 %v2233_v32  ;;  %v1136_v28 = vld [vmem:[%s2367_s6 + $0x2] ss:$0 sm:$0xff] }
  0xe4   : > { %1409 = vmatprep.subr.bf16.mxu1 %v1910_v13  ;;  %1415 = vmatprep.subr.bf16.mxu0 %v1910_v13 }
  0xe5   : > { %v572_v36 = vld [vmem:[#allocation2] sm:$0xff]  ;;  %1286 = vmatprep.mubr.msk.f32.mxu0 %vm1911_vm9, %v1912_v20 }
  0xe6   : > { %v573_v42 = vmul.f32 0.0625, %v572_v36 }
  0xe7   : > { %1411 = vmatpush3.bf16.msra.mxu1 %v1410_v35  ;;  %1417 = vmatpush3.bf16.msra.mxu0 %v2238_v39 }
  0xe8   : > { %1436 = vmatprep.subr.bf16.mxu1 %v1910_v13  ;;  %1418 = vmatprep.subr.bf16.mxu0 %v1910_v13 }
  0xea   : > { %1252 = vmatmul.mubr.msk.f32.vlgmr.msra.gmra.mrb[0].mxu1 %vm400_vm1, %v573_v42 }
  0xeb   : > { %1438 = vmatpush3.bf16.msra.mxu1 %v2243_v43  ;;  %1321 = vmatprep.mubr.msk.f32.mxu1 %vm1911_vm9, %v1912_v20 }
  0xec   : > { %1439 = vmatprep.subr.bf16.mxu1 %v1910_v13  ;;  %1420 = vmatpush3.bf16.msra.mxu0 %v2247_v46 }
  0xed   : > { %1421 = vmatprep.subr.bf16.mxu0 %v1910_v13 }
  0xef   : > { %1441 = vmatpush3.bf16.msra.mxu1 %v2252_v49 }
  0xf0   : > { %1442 = vmatprep.subr.bf16.mxu1 %v1910_v13  ;;  %1423 = vmatpush3.bf16.msra.mxu0 %v2258_v52 }
  0xf1   : > { %1424 = vmatprep.subr.bf16.mxu0 %v1910_v13 }
  0xf3   : > { %1444 = vmatpush3.bf16.msra.mxu1 %v2262_v55 }
  0xf4   : > { %1445 = vmatprep.subr.bf16.mxu1 %v1910_v13  ;;  %1426 = vmatpush3.bf16.msra.mxu0 %v2266_v58 }
  0xf5   : > { %1427 = vmatprep.subr.bf16.mxu0 %v1910_v13 }
  0xf7   : > { %1447 = vmatpush3.bf16.msra.mxu1 %v1446_v61 }
  0xf8   : > { %1448 = vmatprep.subr.bf16.mxu1 %v1910_v13  ;;  %1429 = vmatpush3.bf16.msra.mxu0 %v2272_v0 }
  0xf9   : > { %1430 = vmatprep.subr.bf16.mxu0 %v1910_v13 }
  0xfb   : > { %1450 = vmatpush3.bf16.msra.mxu1 %v1449_v3 }
  0xfc   : > { %1451 = vmatprep.subr.bf16.mxu1 %v1910_v13  ;;  %1432 = vmatpush3.bf16.msra.mxu0 %v1431_v6 }
  0xfd   : > { %1433 = vmatprep.subr.bf16.mxu0 %v1910_v13 }
  0xff   : > { %1453 = vmatpush3.bf16.msra.mxu1 %v1452_v7 }
 0x100   : > { %1454 = vmatprep.subr.bf16.mxu1 %v1910_v13  ;;  %1435 = vmatpush3.bf16.msra.mxu0 %v1434_v17 }
 0x101   : > { %1460 = vmatprep.subr.bf16.mxu0 %v1910_v13 }
 0x103   : > { %1456 = vmatpush3.bf16.msra.mxu1 %v1455_v10 }
 0x104   : > { %1457 = vmatprep.subr.bf16.mxu1 %v1910_v13 }
 0x107   : > { %1459 = vmatpush3.bf16.msra.mxu1 %v1458_v14 }
 0x108   : > { %1484 = vmatprep.subr.bf16.mxu1 %v1910_v13 }
 0x1b5   : > { %v568_v19 = vpop.f32.mrb[0].mxu0 }
 0x1b6   : > { %v569_v21 = vadd.f32 %v1132_v18, %v568_v19  ;;  %v1234_v22 = vpop.f32.mrb[1].mxu0 }
 0x1b8   : > { %1322 = vmatmul.mubr.f32.vlgmr.msra.gmra.mrb[2].mxu1 %v569_v21 }
 0x1b9   : > { %1486 = vmatpush3.bf16.msra.mxu1 %v2243_v43  ;;  %1391 = vmatprep.mubr.msk.f32.mxu1 %vm1911_vm9, %v1912_v20 }
 0x1ba   : > { %1487 = vmatprep.subr.bf16.mxu1 %v1910_v13 }
 0x1bd   : > { %v655_v24 = vpop.f32.mrb[0].mxu1  ;;  %1489 = vmatpush3.bf16.msra.mxu1 %v2252_v49 }
 0x1be   : > { %v656_v25 = vadd.f32 %v1134_v23, %v655_v24  ;;  %v1253_v26 = vpop.f32.mrb[1].mxu1  ;;  %1490 = vmatprep.subr.bf16.mxu1 %v1910_v13 }
 0x1c0   : > { %1287 = vmatmul.mubr.f32.vlgmr.msra.gmra.mrb[2].mxu0 %v656_v25 }
 0x1c1   : > { %1462 = vmatpush3.bf16.msra.mxu0 %v2233_v32  ;;  %1356 = vmatprep.mubr.msk.f32.mxu0 %vm1911_vm9, %v1912_v20 }
 0x1c2   : > { %1463 = vmatprep.subr.bf16.mxu0 %v1910_v13  ;;  %1492 = vmatpush3.bf16.msra.mxu1 %v2262_v55 }
 0x1c3   : > { %1493 = vmatprep.subr.bf16.mxu1 %v1910_v13 }
 0x1c5   : > { %1465 = vmatpush3.bf16.msra.mxu0 %v2238_v39 }
 0x1c6   : > { %1466 = vmatprep.subr.bf16.mxu0 %v1910_v13  ;;  %1495 = vmatpush3.bf16.msra.mxu1 %v1446_v61 }
 0x1c7   : > { %1496 = vmatprep.subr.bf16.mxu1 %v1910_v13 }
 0x1c9   : > { %1468 = vmatpush3.bf16.msra.mxu0 %v2247_v46 }
 0x1ca   : > { %1469 = vmatprep.subr.bf16.mxu0 %v1910_v13  ;;  %1498 = vmatpush3.bf16.msra.mxu1 %v1449_v3 }
 0x1cb   : > { %1499 = vmatprep.subr.bf16.mxu1 %v1910_v13 }
 0x1cd   : > { %1471 = vmatpush3.bf16.msra.mxu0 %v2258_v52 }
 0x1ce   : > { %1472 = vmatprep.subr.bf16.mxu0 %v1910_v13  ;;  %1501 = vmatpush3.bf16.msra.mxu1 %v1452_v7 }
 0x1cf   : > { %1502 = vmatprep.subr.bf16.mxu1 %v1910_v13 }
 0x1d1   : > { %1474 = vmatpush3.bf16.msra.mxu0 %v2266_v58 }
 0x1d2   : > { %1475 = vmatprep.subr.bf16.mxu0 %v1910_v13  ;;  %1504 = vmatpush3.bf16.msra.mxu1 %v1455_v10 }
 0x1d3   : > { %1505 = vmatprep.subr.bf16.mxu1 %v1910_v13 }
 0x1d5   : > { %1477 = vmatpush3.bf16.msra.mxu0 %v2272_v0 }
 0x1d6   : > { %1478 = vmatprep.subr.bf16.mxu0 %v1910_v13  ;;  %1507 = vmatpush3.bf16.msra.mxu1 %v1458_v14 }
 0x1d9   : > { %1480 = vmatpush3.bf16.msra.mxu0 %v1431_v6 }
 0x1da   : > { %1481 = vmatprep.subr.bf16.mxu0 %v1910_v13 }
 0x1dd   : > { %1483 = vmatpush3.bf16.msra.mxu0 %v1434_v17 }
 0x28b   : > { %v827_v20 = vpop.f32.mrb[2].mxu1 }
 0x28c   : > { %v1323_v27 = vpop.f32.mrb[3].mxu1 }
 0x293   : > { %v757_v29 = vpop.f32.mrb[2].mxu0 }
 0x294   : > { %v828_v30 = vadd.f32 %v827_v20, %v757_v29  ;;  %v1288_v31 = vpop.f32.mrb[3].mxu0 }
 0x296   : > { %v835_v32 = vadd.f32 %v1136_v28, %v828_v30 }
 0x298   : > { %v1137_v33 = vmul.f32 -1.442695, %v835_v32 }
 0x29a   : > { %1628 = vpow2.f32 %v1137_v33 }
 0x2a4   : > { %v1629_v34 = vpop.eup %1628 }
 0x2a5   : > { %v839_v35 = vadd.f32 1.0, %v1629_v34 }
 0x2a7   : > { %1630 = vrcp.f32 %v839_v35 }
 0x2b1   : > { %v1631_v36 = vpop.eup %1630 }
 0x2b2   : > { %v842_v37 = vmul.f32 %v1631_v36, %v569_v21  ;;  %v844_v38 = vsub.f32 1.0, %v1631_v36 }
 0x2b4   : > { %v843_v13 = vmax.f32 %v842_v37, 0.0  ;;  %v845_v39 = vmul.f32 %v844_v38, %v656_v25 }
 0x2b6   : > { %1392 = vmatmul.mubr.f32.vlgmr.msra.gmra.mrb[4].mxu1 %v843_v13  ;;  %v846_v40 = vmax.f32 %v845_v39, 0.0 }
 0x2b8   : > { %1357 = vmatmul.mubr.f32.vlgmr.msra.gmra.mrb[4].mxu0 %v846_v40 }
 0x389   : > { %v983_v41 = vpop.f32.mrb[4].mxu1 }
 0x38a   : > { %v1393_v42 = vpop.f32.mrb[5].mxu1 }
 0x38b   : > { %v913_v43 = vpop.f32.mrb[4].mxu0 }
 0x38c   : > { %v984_v44 = vadd.f32 %v983_v41, %v913_v43  ;;  %v1358_v45 = vpop.f32.mrb[5].mxu0 }
 0x38e   : > { %v987_v46 = vadd.f32 %v1136_v28, %v984_v44 }
 0x390   : > { %988 = vst [vmem:[#allocation14] sm:$0xff] %v987_v46 }
 0x391 PF: > { %p1565_p2 = scmp.eq.s32.totalorder %s1983_s30, 1  ;;  %s1913_s12 = smov [#allocation14]  }
 0x392   : > { %s998_s13 = sshll.u32 %s1913_s12, 4  ;;  %s999_s13 = int_to_ptr.vmem [resolvable:$true] %s998_s13 }
 0x393   : > { %s1802_s15 = scalar_lea.vmem %s999_s13, 128  ;;  %p1809_p6 = scmp.lt.s32.totalorder %s999_s13, %s999_s13 }
 0x394   : > { %p1803_p3 = scmp.ne.s32.totalorder %s999_s13, %s1802_s15  ;;  %p1810_p9 = scmp.lt.s32.totalorder %s1802_s15, %s1802_s15 }
 0x396   : > { %p1804_p12 = pnand %p1803_p3, %p1565_p2  ;;  %p1811_p7 = por %p1810_p9, %p1809_p6 }
 0x398   : > { %p1805_p0 = pneg %p1804_p12 }
 0x39a   : > { %p1812_p1 = pnand %p1811_p7, %p1805_p0 }
 0x39c   : > { %1815 = shalt.err (!%p1812_p1)
}
 0x39d   : > { %s1816_s22 = scalar_lea.hbm %s2368_s7, 128 }
 0x39e   : > { %p1817_p4 = scmp.ne.s32.totalorder %s2368_s7, %s1816_s22  ;;  %p1822_p10 = scmp.lt.u32.totalorder %s1816_s22, %s2368_s7 }
 0x3a0   : > { %p1818_p5 = pnand %p1817_p4, %p1565_p2 }
 0x3a2   : > { %p1819_p8 = pneg %p1818_p5 }
 0x3a4   : > { %p1824_p11 = pnand %p1822_p10, %p1819_p8 }
 0x3a6   : > { %1827 = shalt.err (!%p1824_p11)
}
 0x3a7   : > { %1531 = dma.vmem_to_hbm [thread:$0]  (%p1565_p2), %s999_s13, 128, %s2368_s7, [#allocation5]  }
 0x3a8   : > { %1873 = dma.done.wait (%p1565_p2), [#allocation5], 128  }
 0x3a9   : > { %1875 = vsyncadd (%p1565_p2), [#allocation5], 4294967168 }
 0x3aa PF: > { %s24_s29 = sadd.s32 1, %s1898_s29   ;;  %s2391_s24 = smov %s1882_s25 }
 0x3ab   : > { %p21_p13 = scmp.ge.s32.totalorder %s24_s29, 4   ;;  %s2392_s25 = smov %s1886_s26 }
 0x3ac   : > { %s2393_s26 = smov %s2143_s11  ;;  %s2394_s27 = smov %s1894_s28 }
 0x3ad   : > { %s2395_s28 = smov %s2397_s20  ;;  %23 = sbr.rel (!%p21_p13) target bundleno = 10 (0xa), region = 116 }
 0x3b4   :  { %1011 = vsyncpa [#allocation4], 1 }
 0x3b5   :  { %1013 = vsyncpa [#allocation4 + $0x1], 1 }
 0x3b6   :  { %1014 = vsyncpa [#allocation7], 1 }
 0x3b7   :  { %1016 = vsyncpa [#allocation7 + $0x1], 1 }
 0x3b8   :  { %1017 = vsyncpa [#allocation10], 1 }
 0x3b9   :  { %1018 = vsyncpa [#allocation13], 1 }
 0x3ba   :  { %1019 = vsyncpa [#allocation5], 1 }
 0x3bb   :  { %1021 = vsyncpa [#allocation5 + $0x1], 1 }

</bundles_post_ra>
